<compile_context>
chip_gen: v7x
topology: tpu7x:2x2x1
jax: 0.10.0
libtpu: 0.0.40
codegen_flags: <defaults>
</compile_context>

<pallas_src>
import jax
import jax.numpy as jnp
import numpy as np
from jax.experimental import pallas as pl
from jax.experimental.pallas import tpu as pltpu

C_IN, C1, C2, C3, D_OUT, K, PAD = 512, 256, 128, 512, 768, 5, 2


def adapter_kernel(x_ref, w1_ref, b1_ref, w2_ref, b2_ref, w3_ref, b3_ref,
                   wl_ref, bl_ref, out_ref):
    # x_ref: (TB, C_IN) f32 batch tile; w*_ref: bf16 center taps (C_in, C_out);
    # b*_ref: f32 (1, C_out). Hoist bias loads once (JAX does not CSE broadcasts).
    b1 = b1_ref[...]
    b2 = b2_ref[...]
    b3 = b3_ref[...]
    bl = bl_ref[...]

    x = x_ref[...].astype(jnp.bfloat16)       # bf16 feed to the MXU, f32 accumulate

    # Conv1d(512 -> 256) center tap + ReLU (f32 epilogue)
    h1 = jnp.maximum(
        jnp.dot(x, w1_ref[...], preferred_element_type=jnp.float32) + b1,
        0.0).astype(jnp.bfloat16)
    # Conv1d(256 -> 128) center tap + ReLU
    h2 = jnp.maximum(
        jnp.dot(h1, w2_ref[...], preferred_element_type=jnp.float32) + b2,
        0.0).astype(jnp.bfloat16)
    # Conv1d(128 -> 512) center tap + ReLU
    h3 = jnp.maximum(
        jnp.dot(h2, w3_ref[...], preferred_element_type=jnp.float32) + b3,
        0.0).astype(jnp.bfloat16)
    # flatten (L == 1, so (TB, 512) already matches PyTorch's channel-major view)
    # + Linear(512 -> 768); store f32.
    out_ref[...] = (jnp.dot(h3, wl_ref[...],
                            preferred_element_type=jnp.float32) + bl)


def _round_up(x, m):
    return ((x + m - 1) // m) * m


@jax.jit
def modality_adapter(x_ncl, w1, b1, w2, b2, w3, b3, wl, bl):
    """x_ncl: (B, 512, L) PyTorch NCL input. Returns (B, 768). Requires L == 1."""
    B, cin, L = x_ncl.shape
    assert cin == C_IN
    assert C3 * L == 512, "bottleneck Linear(512, 768) requires L == 1"

    # Free bitcast-reshape; no extra HBM passes (no slice/astype/pad copies).
    x = jnp.reshape(x_ncl, (B, C_IN))

    # Center conv taps + linear weight in bf16 (one-time, ~1.2 MiB total);
    # biases stay f32 and are added to the f32 accumulators.
    w1c = w1[PAD].astype(jnp.bfloat16)
    w2c = w2[PAD].astype(jnp.bfloat16)
    w3c = w3[PAD].astype(jnp.bfloat16)
    wlc = wl.astype(jnp.bfloat16)

    # Batch tile: multiple of 8 sublanes, capped at 1024, and >= 2 grid steps
    # whenever B > 8 so the "parallel" axis keeps both v7x TensorCores busy.
    TB = min(1024, max(8, _round_up(pl.cdiv(B, 2), 8)))
    grid = (pl.cdiv(B, TB),)   # last block may be partial; stores are masked

    out = pl.pallas_call(
        adapter_kernel,
        out_shape=jax.ShapeDtypeStruct((B, D_OUT), jnp.float32),
        grid=grid,
        in_specs=[
            pl.BlockSpec((TB, C_IN), lambda i: (i, 0)),     # x batch tile (f32)
            pl.BlockSpec((C_IN, C1), lambda i: (0, 0)),     # w1 center tap (bf16)
            pl.BlockSpec((1, C1), lambda i: (0, 0)),        # b1 (f32)
            pl.BlockSpec((C1, C2), lambda i: (0, 0)),       # w2 center tap (bf16)
            pl.BlockSpec((1, C2), lambda i: (0, 0)),        # b2 (f32)
            pl.BlockSpec((C2, C3), lambda i: (0, 0)),       # w3 center tap (bf16)
            pl.BlockSpec((1, C3), lambda i: (0, 0)),        # b3 (f32)
            pl.BlockSpec((C3, D_OUT), lambda i: (0, 0)),    # linear weight (bf16)
            pl.BlockSpec((1, D_OUT), lambda i: (0, 0)),     # linear bias (f32)
        ],
        out_specs=pl.BlockSpec((TB, D_OUT), lambda i: (i, 0)),
        compiler_params=pltpu.CompilerParams(
            dimension_semantics=("parallel",),              # batch across TCs
            vmem_limit_bytes=32 * 1024 * 1024,
        ),
    )(x, w1c, b1, w2c, b2, w3c, b3, wlc, bl)
    return out


def ref_forward(x_ncl, w1, b1, w2, b2, w3, b3, wl, bl):
    """Pure-JAX f32 reference of the PyTorch forward (full tap loops)."""
    x = jnp.transpose(x_ncl, (0, 2, 1))  # NLC
    def conv_relu(h, w, b):
        B, L, _ = h.shape
        hp = jnp.pad(h, ((0, 0), (PAD, PAD), (0, 0)))
        acc = jnp.zeros((B, L, w.shape[2]), jnp.float32)
        for k in range(K):
            acc = acc + jnp.einsum('blc,cd->bld', hp[:, k:k + L, :], w[k])
        return jnp.maximum(acc + b[None], 0.0)
    h = conv_relu(x, w1, b1)
    h = conv_relu(h, w2, b2)
    h = conv_relu(h, w3, b3)
    flat = h.reshape(h.shape[0], -1)   # L == 1 -> same ordering as PyTorch view
    return flat @ wl + bl


def init_params(key):
    ks = jax.random.split(key, 8)
    def u(k, shape, fan_in):
        bound = 1.0 / np.sqrt(fan_in)
        return jax.random.uniform(k, shape, jnp.float32, -bound, bound)
    w1 = u(ks[0], (K, C_IN, C1), C_IN * K)
    b1 = u(ks[1], (1, C1), C_IN * K)
    w2 = u(ks[2], (K, C1, C2), C1 * K)
    b2 = u(ks[3], (1, C2), C1 * K)
    w3 = u(ks[4], (K, C2, C3), C2 * K)
    b3 = u(ks[5], (1, C3), C2 * K)
    wl = u(ks[6], (C3, D_OUT), C3)
    bl = u(ks[7], (1, D_OUT), C3)
    return w1, b1, w2, b2, w3, b3, wl, bl


if __name__ == "__main__":
    key = jax.random.PRNGKey(0)
    k_x, k_p = jax.random.split(key)

    B, L = 2, 1                       # Linear(512, 768) after flatten forces L=1
    x = jax.random.normal(k_x, (B, C_IN, L), jnp.float32)   # PyTorch NCL input
    params = init_params(k_p)

    out = modality_adapter(x, *params)
    out = jax.block_until_ready(out)

    ref = ref_forward(x, *params)
    # bf16 matmuls with f32 accumulation vs the f32 reference: ~1e-2 relative.
    np.testing.assert_allclose(np.asarray(out), np.asarray(ref),
                               rtol=2e-2, atol=2e-2)
    assert out.shape == (B, D_OUT)
    print("KERNEL_OK")
</pallas_src>

<mosaic_0001>
module attributes {stable_mosaic.version = 11 : i64} {
  func.func @adapter_kernel(%arg0: i32, %arg1: memref<8x512xf32, #tpu.memory_space<vmem>>, %arg2: memref<512x256xbf16, #tpu.memory_space<vmem>>, %arg3: memref<1x256xf32, #tpu.memory_space<vmem>>, %arg4: memref<256x128xbf16, #tpu.memory_space<vmem>>, %arg5: memref<1x128xf32, #tpu.memory_space<vmem>>, %arg6: memref<128x512xbf16, #tpu.memory_space<vmem>>, %arg7: memref<1x512xf32, #tpu.memory_space<vmem>>, %arg8: memref<512x768xbf16, #tpu.memory_space<vmem>>, %arg9: memref<1x768xf32, #tpu.memory_space<vmem>>, %arg10: memref<8x768xf32, #tpu.memory_space<vmem>>) attributes {dimension_semantics = [#tpu.dimension_semantics<parallel>], iteration_bounds = array<i64: 1>, scalar_prefetch = 0 : i64, scratch_operands = 0 : i64, tpu.core_type = #tpu.core_type<tc>, window_params = [{transform_indices = @transform_0, window_bounds = array<i64: 8, 512>}, {pipeline_mode = #tpu.pipeline_mode<synchronous>, transform_indices = @transform_1, window_bounds = array<i64: 512, 256>}, {pipeline_mode = #tpu.pipeline_mode<synchronous>, transform_indices = @transform_2, window_bounds = array<i64: 1, 256>}, {pipeline_mode = #tpu.pipeline_mode<synchronous>, transform_indices = @transform_3, window_bounds = array<i64: 256, 128>}, {pipeline_mode = #tpu.pipeline_mode<synchronous>, transform_indices = @transform_4, window_bounds = array<i64: 1, 128>}, {pipeline_mode = #tpu.pipeline_mode<synchronous>, transform_indices = @transform_5, window_bounds = array<i64: 128, 512>}, {pipeline_mode = #tpu.pipeline_mode<synchronous>, transform_indices = @transform_6, window_bounds = array<i64: 1, 512>}, {pipeline_mode = #tpu.pipeline_mode<synchronous>, transform_indices = @transform_7, window_bounds = array<i64: 512, 768>}, {pipeline_mode = #tpu.pipeline_mode<synchronous>, transform_indices = @transform_8, window_bounds = array<i64: 1, 768>}, {transform_indices = @transform_9, window_bounds = array<i64: 8, 768>}]} {
    %c0 = arith.constant 0 : index
    %c0_0 = arith.constant 0 : index
    %0 = vector.load %arg3[%c0, %c0_0] : memref<1x256xf32, #tpu.memory_space<vmem>>, vector<1x256xf32>
    %c0_1 = arith.constant 0 : index
    %c0_2 = arith.constant 0 : index
    %1 = vector.load %arg5[%c0_1, %c0_2] : memref<1x128xf32, #tpu.memory_space<vmem>>, vector<1x128xf32>
    %c0_3 = arith.constant 0 : index
    %c0_4 = arith.constant 0 : index
    %2 = vector.load %arg7[%c0_3, %c0_4] : memref<1x512xf32, #tpu.memory_space<vmem>>, vector<1x512xf32>
    %c0_5 = arith.constant 0 : index
    %c0_6 = arith.constant 0 : index
    %3 = vector.load %arg9[%c0_5, %c0_6] : memref<1x768xf32, #tpu.memory_space<vmem>>, vector<1x768xf32>
    %c0_7 = arith.constant 0 : index
    %c0_8 = arith.constant 0 : index
    %4 = vector.load %arg1[%c0_7, %c0_8] : memref<8x512xf32, #tpu.memory_space<vmem>>, vector<8x512xf32>
    %5 = arith.truncf %4 : vector<8x512xf32> to vector<8x512xbf16>
    %c0_9 = arith.constant 0 : index
    %c0_10 = arith.constant 0 : index
    %6 = vector.load %arg2[%c0_9, %c0_10] : memref<512x256xbf16, #tpu.memory_space<vmem>>, vector<512x256xbf16>
    %cst = arith.constant dense<0.000000e+00> : vector<8x256xf32>
    %7 = tpu.matmul %5, %6, %cst {dimension_numbers = #tpu.dot_dimension_numbers<[1], [0], [0], [1], [0, 0, 1, 1], [], []>} : vector<8x512xbf16>, vector<512x256xbf16>, vector<8x256xf32> -> vector<8x256xf32>
    %8 = vector.broadcast %0 : vector<1x256xf32> to vector<8x256xf32>
    %9 = arith.addf %7, %8 : vector<8x256xf32>
    %cst_11 = arith.constant 0.000000e+00 : f32
    %10 = vector.broadcast %cst_11 : f32 to vector<8x256xf32>
    %11 = arith.maximumf %9, %10 : vector<8x256xf32>
    %12 = arith.truncf %11 : vector<8x256xf32> to vector<8x256xbf16>
    %c0_12 = arith.constant 0 : index
    %c0_13 = arith.constant 0 : index
    %13 = vector.load %arg4[%c0_12, %c0_13] : memref<256x128xbf16, #tpu.memory_space<vmem>>, vector<256x128xbf16>
    %cst_14 = arith.constant dense<0.000000e+00> : vector<8x128xf32>
    %14 = tpu.matmul %12, %13, %cst_14 {dimension_numbers = #tpu.dot_dimension_numbers<[1], [0], [0], [1], [0, 0, 1, 1], [], []>} : vector<8x256xbf16>, vector<256x128xbf16>, vector<8x128xf32> -> vector<8x128xf32>
    %15 = vector.broadcast %1 : vector<1x128xf32> to vector<8x128xf32>
    %16 = arith.addf %14, %15 : vector<8x128xf32>
    %cst_15 = arith.constant 0.000000e+00 : f32
    %17 = vector.broadcast %cst_15 : f32 to vector<8x128xf32>
    %18 = arith.maximumf %16, %17 : vector<8x128xf32>
    %19 = arith.truncf %18 : vector<8x128xf32> to vector<8x128xbf16>
    %c0_16 = arith.constant 0 : index
    %c0_17 = arith.constant 0 : index
    %20 = vector.load %arg6[%c0_16, %c0_17] : memref<128x512xbf16, #tpu.memory_space<vmem>>, vector<128x512xbf16>
    %cst_18 = arith.constant dense<0.000000e+00> : vector<8x512xf32>
    %21 = tpu.matmul %19, %20, %cst_18 {dimension_numbers = #tpu.dot_dimension_numbers<[1], [0], [0], [1], [0, 0, 1, 1], [], []>} : vector<8x128xbf16>, vector<128x512xbf16>, vector<8x512xf32> -> vector<8x512xf32>
    %22 = vector.broadcast %2 : vector<1x512xf32> to vector<8x512xf32>
    %23 = arith.addf %21, %22 : vector<8x512xf32>
    %cst_19 = arith.constant 0.000000e+00 : f32
    %24 = vector.broadcast %cst_19 : f32 to vector<8x512xf32>
    %25 = arith.maximumf %23, %24 : vector<8x512xf32>
    %26 = arith.truncf %25 : vector<8x512xf32> to vector<8x512xbf16>
    %c0_20 = arith.constant 0 : index
    %c0_21 = arith.constant 0 : index
    %27 = vector.load %arg8[%c0_20, %c0_21] : memref<512x768xbf16, #tpu.memory_space<vmem>>, vector<512x768xbf16>
    %cst_22 = arith.constant dense<0.000000e+00> : vector<8x768xf32>
    %28 = tpu.matmul %26, %27, %cst_22 {dimension_numbers = #tpu.dot_dimension_numbers<[1], [0], [0], [1], [0, 0, 1, 1], [], []>} : vector<8x512xbf16>, vector<512x768xbf16>, vector<8x768xf32> -> vector<8x768xf32>
    %29 = vector.broadcast %3 : vector<1x768xf32> to vector<8x768xf32>
    %30 = arith.addf %28, %29 : vector<8x768xf32>
    %c0_23 = arith.constant 0 : index
    %c0_24 = arith.constant 0 : index
    %31 = vector.load %arg10[%c0_23, %c0_24] : memref<8x768xf32, #tpu.memory_space<vmem>>, vector<8x768xf32>
    tpu.vector_store %arg10[%c0_23, %c0_24], %30 {strides = array<i32>} : memref<8x768xf32, #tpu.memory_space<vmem>>, vector<8x768xf32>,
    return
  }
  func.func @transform_0(%arg0: i32) -> (i32, i32) {
    %c0_i32 = arith.constant 0 : i32
    %c0_i32_0 = arith.constant 0 : i32
    return %arg0, %c0_i32 : i32, i32
  }
  func.func @transform_1(%arg0: i32) -> (i32, i32) {
    %c0_i32 = arith.constant 0 : i32
    %c0_i32_0 = arith.constant 0 : i32
    %c0_i32_1 = arith.constant 0 : i32
    return %c0_i32, %c0_i32_0 : i32, i32
  }
  func.func @transform_2(%arg0: i32) -> (i32, i32) {
    %c0_i32 = arith.constant 0 : i32
    %c0_i32_0 = arith.constant 0 : i32
    %c0_i32_1 = arith.constant 0 : i32
    return %c0_i32, %c0_i32_0 : i32, i32
  }
  func.func @transform_3(%arg0: i32) -> (i32, i32) {
    %c0_i32 = arith.constant 0 : i32
    %c0_i32_0 = arith.constant 0 : i32
    %c0_i32_1 = arith.constant 0 : i32
    return %c0_i32, %c0_i32_0 : i32, i32
  }
  func.func @transform_4(%arg0: i32) -> (i32, i32) {
    %c0_i32 = arith.constant 0 : i32
    %c0_i32_0 = arith.constant 0 : i32
    %c0_i32_1 = arith.constant 0 : i32
    return %c0_i32, %c0_i32_0 : i32, i32
  }
  func.func @transform_5(%arg0: i32) -> (i32, i32) {
    %c0_i32 = arith.constant 0 : i32
    %c0_i32_0 = arith.constant 0 : i32
    %c0_i32_1 = arith.constant 0 : i32
    return %c0_i32, %c0_i32_0 : i32, i32
  }
  func.func @transform_6(%arg0: i32) -> (i32, i32) {
    %c0_i32 = arith.constant 0 : i32
    %c0_i32_0 = arith.constant 0 : i32
    %c0_i32_1 = arith.constant 0 : i32
    return %c0_i32, %c0_i32_0 : i32, i32
  }
  func.func @transform_7(%arg0: i32) -> (i32, i32) {
    %c0_i32 = arith.constant 0 : i32
    %c0_i32_0 = arith.constant 0 : i32
    %c0_i32_1 = arith.constant 0 : i32
    return %c0_i32, %c0_i32_0 : i32, i32
  }
  func.func @transform_8(%arg0: i32) -> (i32, i32) {
    %c0_i32 = arith.constant 0 : i32
    %c0_i32_0 = arith.constant 0 : i32
    %c0_i32_1 = arith.constant 0 : i32
    return %c0_i32, %c0_i32_0 : i32, i32
  }
  func.func @transform_9(%arg0: i32) -> (i32, i32) {
    %c0_i32 = arith.constant 0 : i32
    %c0_i32_0 = arith.constant 0 : i32
    return %arg0, %c0_i32 : i32, i32
  }
}

</mosaic_0001>

<bundles_post_ra>
// kernel: modality_adapter.1
= control target key start
LH: loop header
LB: loop body
LE: loop exit
PB: predicated region body
PF: predicated region fallthrough
CT: control target
= control target key end

     0   :  { %14 = vsyncpa [#allocation3], 0  ;;  %v3407_v9 = vmov 1983009808   ;;  %v53_v11 = vlaneseq  ;;  %s4484_s0 = inlined_call_operand.vmem [shape: f32[2,512], index: 0, kind: input, shape index: {}]   ;;  %s4485_s1 = inlined_call_operand.vmem [shape: bf16[512,256], index: 1, kind: input, shape index: {}]   ;;  %s4486_s2 = inlined_call_operand.vmem [shape: f32[1,256], index: 2, kind: input, shape index: {}]   ;;  %s4487_s3 = inlined_call_operand.vmem [shape: bf16[256,128], index: 3, kind: input, shape index: {}]   ;;  %s4488_s4 = inlined_call_operand.vmem [shape: f32[1,128], index: 4, kind: input, shape index: {}]   ;;  %s4489_s5 = inlined_call_operand.vmem [shape: bf16[128,512], index: 5, kind: input, shape index: {}]   ;;  %s4490_s6 = inlined_call_operand.vmem [shape: f32[1,512], index: 6, kind: input, shape index: {}]   ;;  %s4491_s7 = inlined_call_operand.vmem [shape: bf16[512,768], index: 7, kind: input, shape index: {}]   ;;  %s4492_s8 = inlined_call_operand.vmem [shape: f32[1,768], index: 8, kind: input, shape index: {}]   ;;  %s4493_s9 = inlined_call_operand.hbm [shape: f32[2,768], index: 9, kind: output, shape index: {}]  }
   0x1   :  { %v2929_v0 = vld [vmem:[%s4485_s1 + $0x4] ss:$8 sps:$4 sm:$0xff]   ;;  %v2931_v1 = vld [vmem:[%s4485_s1] ss:$8 sps:$4 sm:$0xff]   ;;  %v2932_v2 = vld [vmem:[%s4485_s1 + $0x14] ss:$8 sps:$4 sm:$0xff]   ;;  %v51_v10 = vunpack.c.l.s4 %v3407_v9 }
   0x2   :  { %485 = vmatprep.subr.bf16.mxu0 %v2929_v0  ;;  %v2934_v3 = vld [vmem:[%s4485_s1 + $0x10] ss:$8 sps:$4 sm:$0xff]   ;;  %v2935_v4 = vld [vmem:[%s4485_s1 + $0x24] ss:$8 sps:$4 sm:$0xff]   ;;  %v2937_v5 = vld [vmem:[%s4485_s1 + $0x20] ss:$8 sps:$4 sm:$0xff]  }
   0x3   :  { %486 = vmatpush1.bf16.msra.mxu0 %v2931_v1  ;;  %v2938_v6 = vld [vmem:[%s4485_s1 + $0x34] ss:$8 sps:$4 sm:$0xff]   ;;  %v2940_v7 = vld [vmem:[%s4485_s1 + $0x30] ss:$8 sps:$4 sm:$0xff]   ;;  %v2941_v8 = vld [vmem:[%s4485_s1 + $0x44] ss:$8 sps:$4 sm:$0xff]   ;;  %v52_v14 = vunpack.c.0.s8 %v51_v10 }
   0x4   :  { %487 = vmatprep.subr.bf16.mxu0 %v2932_v2  ;;  %v2943_v12 = vld [vmem:[%s4485_s1 + $0x40] ss:$8 sps:$4 sm:$0xff]   ;;  %v2944_v13 = vld [vmem:[%s4485_s1 + $0x54] ss:$8 sps:$4 sm:$0xff]   ;;  %v3495_v15 = vshrl.u32 %v53_v11, 7 }
   0x5   :  { %v2946_v16 = vld [vmem:[%s4485_s1 + $0x50] ss:$8 sps:$4 sm:$0xff]   ;;  %v2947_v17 = vld [vmem:[%s4485_s1 + $0x64] ss:$8 sps:$4 sm:$0xff]   ;;  %v2949_v19 = vld [vmem:[%s4485_s1 + $0x60] ss:$8 sps:$4 sm:$0xff]  }
   0x6   :  { %v3504_v18 = vsub.s32 %v52_v14, %v3495_v15  ;;  %v2977_v20 = vld [vmem:[%s4484_s0] ss:$8 sps:$4 sm:$0xff]   ;;  %v2979_v21 = vld [vmem:[%s4484_s0 + $0x4] ss:$8 sps:$4 sm:$0xff]   ;;  %v2980_v22 = vld [vmem:[%s4484_s0 + $0x10] ss:$8 sps:$4 sm:$0xff]  }
   0x7   :  { %488 = vmatpush1.bf16.msra.mxu0 %v2934_v3  ;;  %v2982_v23 = vld [vmem:[%s4484_s0 + $0x14] ss:$8 sps:$4 sm:$0xff]   ;;  %v2952_v30 = vld [vmem:[%s4485_s1 + $0x70] ss:$8 sps:$4 sm:$0xff]   ;;  %v2953_v32 = vld [vmem:[%s4485_s1 + $0x84] ss:$8 sps:$4 sm:$0xff]  }
   0x8   :  { %489 = vmatprep.subr.bf16.mxu0 %v2935_v4  ;;  %v2950_v24 = vld [vmem:[%s4485_s1 + $0x74] ss:$8 sps:$4 sm:$0xff]   ;;  %v56_v25 = vrot.slane %v2977_v20, %v3504_v18  ;;  %v70_v26 = vrot.slane %v2980_v22, %v3504_v18  ;;  %v63_v27 = vrot.slane %v2979_v21, %v3504_v18  ;;  %v77_v28 = vrot.slane %v2982_v23, %v3504_v18  ;;  %v2955_v34 = vld [vmem:[%s4485_s1 + $0x80] ss:$8 sps:$4 sm:$0xff]   ;;  %v2958_v36 = vld [vmem:[%s4485_s1 + $0x90] ss:$8 sps:$4 sm:$0xff]  }
   0x9   :  { %v2956_v35 = vld [vmem:[%s4485_s1 + $0x94] ss:$8 sps:$4 sm:$0xff]   ;;  %v2959_v37 = vld [vmem:[%s4485_s1 + $0xa4] ss:$8 sps:$4 sm:$0xff]   ;;  %v2961_v38 = vld [vmem:[%s4485_s1 + $0xa0] ss:$8 sps:$4 sm:$0xff]  }
   0xa   :  { %v79_v29 = vcombine.high %v56_v25, %v70_v26  ;;  %v3531_v31 = vcombine.low %v63_v27, %v77_v28  ;;  %v2962_v39 = vld [vmem:[%s4485_s1 + $0xb4] ss:$8 sps:$4 sm:$0xff]   ;;  %v2964_v40 = vld [vmem:[%s4485_s1 + $0xb0] ss:$8 sps:$4 sm:$0xff]   ;;  %v2965_v41 = vld [vmem:[%s4485_s1 + $0xc4] ss:$8 sps:$4 sm:$0xff]   ;;  %v78_v50 = vcombine.low %v56_v25, %v70_v26  ;;  %v81_v51 = vcombine.high %v63_v27, %v77_v28 }
   0xb   :  { %490 = vmatpush1.bf16.msra.mxu0 %v2937_v5  ;;  %v2967_v42 = vld [vmem:[%s4485_s1 + $0xc0] ss:$8 sps:$4 sm:$0xff]   ;;  %v2968_v43 = vld [vmem:[%s4485_s1 + $0xd4] ss:$8 sps:$4 sm:$0xff]   ;;  %v2970_v44 = vld [vmem:[%s4485_s1 + $0xd0] ss:$8 sps:$4 sm:$0xff]  }
   0xc   :  { %491 = vmatprep.subr.bf16.mxu0 %v2938_v6  ;;  %v87_v33 = vpack.c.bf16 %v79_v29, %v79_v29  ;;  %v2971_v45 = vld [vmem:[%s4485_s1 + $0xe4] ss:$8 sps:$4 sm:$0xff]   ;;  %v2973_v46 = vld [vmem:[%s4485_s1 + $0xe0] ss:$8 sps:$4 sm:$0xff]   ;;  %v2974_v47 = vld [vmem:[%s4485_s1 + $0xf4] ss:$8 sps:$4 sm:$0xff]   ;;  %v86_v53 = vpack.c.bf16 %v78_v50, %v78_v50  ;;  %v89_v55 = vpack.c.bf16 %v81_v51, %v81_v51  ;;  %v88_v25 = vpack.c.bf16 %v3531_v31, %v3531_v31 }
   0xd   :  { %v2976_v48 = vld [vmem:[%s4485_s1 + $0xf0] ss:$8 sps:$4 sm:$0xff]   ;;  %v2985_v49 = vld [vmem:[%s4485_s1 + $0x104] ss:$8 sps:$4 sm:$0xff]   ;;  %v2983_v52 = vld [vmem:[%s4485_s1 + $0x100] ss:$8 sps:$4 sm:$0xff]  }
   0xe   :  { %517 = vmatprep.mubr.bf16.mxu0 %v87_v33  ;;  %v2988_v54 = vld [vmem:[%s4485_s1 + $0x114] ss:$8 sps:$4 sm:$0xff]   ;;  %v2986_v56 = vld [vmem:[%s4485_s1 + $0x110] ss:$8 sps:$4 sm:$0xff]   ;;  %v2991_v57 = vld [vmem:[%s4485_s1 + $0x124] ss:$8 sps:$4 sm:$0xff]  }
   0xf   :  { %492 = vmatpush1.bf16.msra.mxu0 %v2940_v7  ;;  %v2989_v58 = vld [vmem:[%s4485_s1 + $0x120] ss:$8 sps:$4 sm:$0xff]   ;;  %v2994_v59 = vld [vmem:[%s4485_s1 + $0x134] ss:$8 sps:$4 sm:$0xff]   ;;  %v2992_v60 = vld [vmem:[%s4485_s1 + $0x130] ss:$8 sps:$4 sm:$0xff]  }
  0x10   :  { %493 = vmatprep.subr.bf16.mxu0 %v2941_v8  ;;  %v2997_v61 = vld [vmem:[%s4485_s1 + $0x144] ss:$8 sps:$4 sm:$0xff]   ;;  %v2995_v62 = vld [vmem:[%s4485_s1 + $0x140] ss:$8 sps:$4 sm:$0xff]   ;;  %v3000_v63 = vld [vmem:[%s4485_s1 + $0x154] ss:$8 sps:$4 sm:$0xff]  }
  0x11   :  { %v2998_v0 = vld [vmem:[%s4485_s1 + $0x150] ss:$8 sps:$4 sm:$0xff]   ;;  %v3003_v1 = vld [vmem:[%s4485_s1 + $0x164] ss:$8 sps:$4 sm:$0xff]   ;;  %v3001_v2 = vld [vmem:[%s4485_s1 + $0x160] ss:$8 sps:$4 sm:$0xff]  }
  0x12   :  { %v3006_v3 = vld [vmem:[%s4485_s1 + $0x174] ss:$8 sps:$4 sm:$0xff]   ;;  %v3004_v4 = vld [vmem:[%s4485_s1 + $0x170] ss:$8 sps:$4 sm:$0xff]   ;;  %v3009_v5 = vld [vmem:[%s4485_s1 + $0x184] ss:$8 sps:$4 sm:$0xff]  }
  0x13   :  { %494 = vmatpush1.bf16.msra.mxu0 %v2943_v12  ;;  %v3007_v6 = vld [vmem:[%s4485_s1 + $0x180] ss:$8 sps:$4 sm:$0xff]   ;;  %v3012_v7 = vld [vmem:[%s4485_s1 + $0x194] ss:$8 sps:$4 sm:$0xff]   ;;  %v3010_v8 = vld [vmem:[%s4485_s1 + $0x190] ss:$8 sps:$4 sm:$0xff]  }
  0x14   :  { %495 = vmatprep.subr.bf16.mxu0 %v2944_v13  ;;  %v3015_v9 = vld [vmem:[%s4485_s1 + $0x1a4] ss:$8 sps:$4 sm:$0xff]   ;;  %v3013_v10 = vld [vmem:[%s4485_s1 + $0x1a0] ss:$8 sps:$4 sm:$0xff]   ;;  %v3018_v11 = vld [vmem:[%s4485_s1 + $0x1b4] ss:$8 sps:$4 sm:$0xff]  }
  0x15   :  { %v3016_v12 = vld [vmem:[%s4485_s1 + $0x1b0] ss:$8 sps:$4 sm:$0xff]   ;;  %v3021_v13 = vld [vmem:[%s4485_s1 + $0x1c4] ss:$8 sps:$4 sm:$0xff]   ;;  %v3019_v14 = vld [vmem:[%s4485_s1 + $0x1c0] ss:$8 sps:$4 sm:$0xff]  }
  0x16   :  { %v3025_v20 = vld [vmem:[%s4485_s1 + $0x1e0] ss:$8 sps:$4 sm:$0xff]   ;;  %v3030_v21 = vld [vmem:[%s4485_s1 + $0x1f4] ss:$8 sps:$4 sm:$0xff]   ;;  %v3028_v22 = vld [vmem:[%s4485_s1 + $0x1f0] ss:$8 sps:$4 sm:$0xff]  }
  0x17   :  { %496 = vmatpush1.bf16.msra.mxu0 %v2946_v16  ;;  %v3024_v16 = vld [vmem:[%s4485_s1 + $0x1d4] ss:$8 sps:$4 sm:$0xff]   ;;  %v3031_v23 = vld [vmem:[%s4487_s3 + $0x40] sm:$0xff]   ;;  %v3033_v26 = vld [vmem:[%s4487_s3 + $0x48] sm:$0xff]  }
  0x18   :  { %497 = vmatprep.subr.bf16.mxu0 %v2947_v17  ;;  %v3022_v17 = vld [vmem:[%s4485_s1 + $0x1d0] ss:$8 sps:$4 sm:$0xff]   ;;  %v3034_v27 = vld [vmem:[%s4487_s3 + $0x8] sm:$0xff]   ;;  %v3040_v33 = vld [vmem:[%s4487_s3 + $0x20] sm:$0xff]  }
  0x19   :  { %v3035_v28 = vld [vmem:[%s4487_s3 + $0x50] sm:$0xff]   ;;  %v3038_v31 = vld [vmem:[%s4487_s3 + $0x18] sm:$0xff]  }
  0x1a   :  { %v3036_v29 = vld [vmem:[%s4487_s3 + $0x10] sm:$0xff]  }
  0x1b   :  { %498 = vmatpush1.bf16.msra.mxu0 %v2949_v19  ;;  %v3027_v19 = vld [vmem:[%s4485_s1 + $0x1e4] ss:$8 sps:$4 sm:$0xff]   ;;  %v3064_v51 = vld [vmem:[%s4489_s5 + $0xa0] ss:$16 sps:$4 sm:$0xff]  }
  0x1c   :  { %499 = vmatprep.subr.bf16.mxu0 %v2950_v24  ;;  %v3032_v24 = vld [vmem:[%s4487_s3] sm:$0xff]  }
  0x1d   :  { %v3062_v50 = vld [vmem:[%s4489_s5 + $0xa4] ss:$16 sps:$4 sm:$0xff]  }
  0x1f   :  { %500 = vmatpush1.bf16.msra.mxu0 %v2952_v30  ;;  %v3037_v30 = vld [vmem:[%s4487_s3 + $0x58] sm:$0xff]  }
  0x20   :  { %501 = vmatprep.subr.bf16.mxu0 %v2953_v32  ;;  %v3039_v32 = vld [vmem:[%s4487_s3 + $0x60] sm:$0xff]  }
  0x23   :  { %502 = vmatpush1.bf16.msra.mxu0 %v2955_v34  ;;  %v3041_v34 = vld [vmem:[%s4487_s3 + $0x68] sm:$0xff]  }
  0x24   :  { %503 = vmatprep.subr.bf16.mxu0 %v2956_v35  ;;  %v3042_v35 = vld [vmem:[%s4487_s3 + $0x28] sm:$0xff]  }
  0x27   :  { %504 = vmatpush1.bf16.msra.mxu0 %v2958_v36  ;;  %v3043_v36 = vld [vmem:[%s4487_s3 + $0x70] sm:$0xff]  }
  0x28   :  { %505 = vmatprep.subr.bf16.mxu0 %v2959_v37  ;;  %v3044_v37 = vld [vmem:[%s4487_s3 + $0x30] sm:$0xff]  }
  0x2b   :  { %506 = vmatpush1.bf16.msra.mxu0 %v2961_v38  ;;  %v3045_v38 = vld [vmem:[%s4487_s3 + $0x78] sm:$0xff]  }
  0x2c   :  { %507 = vmatprep.subr.bf16.mxu0 %v2962_v39  ;;  %v3046_v39 = vld [vmem:[%s4487_s3 + $0x38] sm:$0xff]  }
  0x2f   :  { %508 = vmatpush1.bf16.msra.mxu0 %v2964_v40  ;;  %v3047_v40 = vld [vmem:[%s4489_s5 + $0x4] ss:$16 sps:$4 sm:$0xff]  }
  0x30   :  { %509 = vmatprep.subr.bf16.mxu0 %v2965_v41  ;;  %v3049_v41 = vld [vmem:[%s4489_s5] ss:$16 sps:$4 sm:$0xff]   ;;  %960 = vmatprep.subr.bf16.mxu1 %v3047_v40 }
  0x31   :  { %961 = vmatpush1.bf16.msra.mxu1 %v3049_v41  ;;  %v2635_v40 = vld [vmem:[%s4488_s4] ss:$0 sm:$0xff] }
  0x33   :  { %510 = vmatpush1.bf16.msra.mxu0 %v2967_v42  ;;  %v3050_v42 = vld [vmem:[%s4489_s5 + $0x24] ss:$16 sps:$4 sm:$0xff]  }
  0x34   :  { %511 = vmatprep.subr.bf16.mxu0 %v2968_v43  ;;  %v3052_v43 = vld [vmem:[%s4489_s5 + $0x20] ss:$16 sps:$4 sm:$0xff]   ;;  %962 = vmatprep.subr.bf16.mxu1 %v3050_v42 }
  0x35   :  { %963 = vmatpush1.bf16.msra.mxu1 %v3052_v43 }
  0x37   :  { %512 = vmatpush1.bf16.msra.mxu0 %v2970_v44  ;;  %v3053_v44 = vld [vmem:[%s4489_s5 + $0x44] ss:$16 sps:$4 sm:$0xff]  }
  0x38   :  { %513 = vmatprep.subr.bf16.mxu0 %v2971_v45  ;;  %v3055_v45 = vld [vmem:[%s4489_s5 + $0x40] ss:$16 sps:$4 sm:$0xff]   ;;  %964 = vmatprep.subr.bf16.mxu1 %v3053_v44 }
  0x39   :  { %965 = vmatpush1.bf16.msra.mxu1 %v3055_v45 }
  0x3b   :  { %514 = vmatpush1.bf16.msra.mxu0 %v2973_v46  ;;  %v3056_v46 = vld [vmem:[%s4489_s5 + $0x64] ss:$16 sps:$4 sm:$0xff]  }
  0x3c   :  { %515 = vmatprep.subr.bf16.mxu0 %v2974_v47  ;;  %v3058_v47 = vld [vmem:[%s4489_s5 + $0x60] ss:$16 sps:$4 sm:$0xff]   ;;  %966 = vmatprep.subr.bf16.mxu1 %v3056_v46 }
  0x3d   :  { %967 = vmatpush1.bf16.msra.mxu1 %v3058_v47  ;;  %v3071_v47 = vld [vmem:[%s4489_s5 + $0x8] ss:$16 sps:$4 sm:$0xff]  }
  0x3f   :  { %516 = vmatpush1.bf16.msra.mxu0 %v2976_v48  ;;  %v3059_v48 = vld [vmem:[%s4489_s5 + $0x84] ss:$16 sps:$4 sm:$0xff]  }
  0x40   :  { %526 = vmatprep.subr.bf16.mxu0 %v2985_v49  ;;  %v3061_v49 = vld [vmem:[%s4489_s5 + $0x80] ss:$16 sps:$4 sm:$0xff]   ;;  %968 = vmatprep.subr.bf16.mxu1 %v3059_v48 }
  0x41   :  { %969 = vmatpush1.bf16.msra.mxu1 %v3061_v49  ;;  %v3076_v49 = vld [vmem:[%s4489_s5 + $0x2c] ss:$16 sps:$4 sm:$0xff]  }
  0x42   :  { %518 = vmatmul.mubr.bf16.vlgmr.msra.gmra.mrb[0].mxu0 %v86_v53  ;;  %970 = vmatprep.subr.bf16.mxu1 %v3062_v50  ;;  %v34_v53 = vld [vmem:[%s4486_s2] sm:$0x3]  ;;  %v3074_v50 = vld [vmem:[%s4489_s5 + $0x28] ss:$16 sps:$4 sm:$0xff]  }
  0x43   :  { %527 = vmatpush1.bf16.msra.mxu0 %v2983_v52  ;;  %558 = vmatprep.mubr.bf16.mxu0 %v89_v55  ;;  %v3764_v52 = vsub.s32 0, %v3495_v15 }
  0x44   :  { %528 = vmatprep.subr.bf16.mxu0 %v2988_v54  ;;  %v3770_v54 = vsub.s32 1, %v3495_v15 }
  0x45   :  { %971 = vmatpush1.bf16.msra.mxu1 %v3064_v51  ;;  %v158_v55 = vrot.slane %v34_v53, %v3764_v52  ;;  %v3079_v51 = vld [vmem:[%s4489_s5 + $0x4c] ss:$16 sps:$4 sm:$0xff]  }
  0x47   :  { %529 = vmatpush1.bf16.msra.mxu0 %v2986_v56  ;;  %v162_v56 = vrot.slane %v34_v53, %v3770_v54  ;;  %v3077_v53 = vld [vmem:[%s4489_s5 + $0x48] ss:$16 sps:$4 sm:$0xff]  }
  0x48   :  { %530 = vmatprep.subr.bf16.mxu0 %v2991_v57 }
  0x4b   :  { %531 = vmatpush1.bf16.msra.mxu0 %v2989_v58 }
  0x4c   :  { %532 = vmatprep.subr.bf16.mxu0 %v2994_v59 }
  0x4f   :  { %533 = vmatpush1.bf16.msra.mxu0 %v2992_v60 }
  0x50   :  { %534 = vmatprep.subr.bf16.mxu0 %v2997_v61 }
  0x53   :  { %535 = vmatpush1.bf16.msra.mxu0 %v2995_v62 }
  0x54   :  { %536 = vmatprep.subr.bf16.mxu0 %v3000_v63 }
  0x57   :  { %537 = vmatpush1.bf16.msra.mxu0 %v2998_v0 }
  0x58   :  { %538 = vmatprep.subr.bf16.mxu0 %v3003_v1 }
  0x5b   :  { %539 = vmatpush1.bf16.msra.mxu0 %v3001_v2 }
  0x5c   :  { %540 = vmatprep.subr.bf16.mxu0 %v3006_v3  ;;  %v3065_v3 = vld [vmem:[%s4489_s5 + $0xc4] ss:$16 sps:$4 sm:$0xff]  }
  0x5d   :  { %972 = vmatprep.subr.bf16.mxu1 %v3065_v3  ;;  %v3103_v3 = vld [vmem:[%s4491_s7 + $0x34] ss:$24 sps:$4 sm:$0xff]  }
  0x5f   :  { %541 = vmatpush1.bf16.msra.mxu0 %v3004_v4  ;;  %v3067_v4 = vld [vmem:[%s4489_s5 + $0xc0] ss:$16 sps:$4 sm:$0xff]  }
  0x60   :  { %542 = vmatprep.subr.bf16.mxu0 %v3009_v5  ;;  %973 = vmatpush1.bf16.msra.mxu1 %v3067_v4  ;;  %v3068_v5 = vld [vmem:[%s4489_s5 + $0xe4] ss:$16 sps:$4 sm:$0xff]   ;;  %v3101_v4 = vld [vmem:[%s4491_s7 + $0x30] ss:$24 sps:$4 sm:$0xff]  }
  0x61   :  { %974 = vmatprep.subr.bf16.mxu1 %v3068_v5  ;;  %v3109_v5 = vld [vmem:[%s4491_s7 + $0x64] ss:$24 sps:$4 sm:$0xff]  }
  0x63   :  { %543 = vmatpush1.bf16.msra.mxu0 %v3007_v6  ;;  %v3070_v6 = vld [vmem:[%s4489_s5 + $0xe0] ss:$16 sps:$4 sm:$0xff]  }
  0x64   :  { %544 = vmatprep.subr.bf16.mxu0 %v3012_v7  ;;  %975 = vmatpush1.bf16.msra.mxu1 %v3070_v6  ;;  %v3073_v7 = vld [vmem:[%s4489_s5 + $0xc] ss:$16 sps:$4 sm:$0xff]   ;;  %v3107_v6 = vld [vmem:[%s4491_s7 + $0x60] ss:$24 sps:$4 sm:$0xff]  }
  0x65   :  { %1001 = vmatprep.subr.bf16.mxu1 %v3073_v7  ;;  %v3115_v7 = vld [vmem:[%s4491_s7 + $0x94] ss:$24 sps:$4 sm:$0xff]  }
  0x67   :  { %545 = vmatpush1.bf16.msra.mxu0 %v3010_v8  ;;  %v3408_v8 = vmov 0  }
  0x68   :  { %546 = vmatprep.subr.bf16.mxu0 %v3015_v9  ;;  %992 = vmatprep.mubr.bf16.mxu1 %v3408_v8  ;;  %v3098_v9 = vld [vmem:[%s4491_s7 + $0x8] ss:$24 sps:$4 sm:$0xff]  }
  0x6b   :  { %547 = vmatpush1.bf16.msra.mxu0 %v3013_v10  ;;  %v3100_v10 = vld [vmem:[%s4491_s7 + $0xc] ss:$24 sps:$4 sm:$0xff]  }
  0x6c   :  { %548 = vmatprep.subr.bf16.mxu0 %v3018_v11  ;;  %v3106_v11 = vld [vmem:[%s4491_s7 + $0x3c] ss:$24 sps:$4 sm:$0xff]  }
  0x6f   :  { %549 = vmatpush1.bf16.msra.mxu0 %v3016_v12  ;;  %v3104_v12 = vld [vmem:[%s4491_s7 + $0x38] ss:$24 sps:$4 sm:$0xff]  }
  0x70   :  { %550 = vmatprep.subr.bf16.mxu0 %v3021_v13  ;;  %v3112_v13 = vld [vmem:[%s4491_s7 + $0x6c] ss:$24 sps:$4 sm:$0xff]  }
  0x73   :  { %551 = vmatpush1.bf16.msra.mxu0 %v3019_v14  ;;  %v3110_v14 = vld [vmem:[%s4491_s7 + $0x68] ss:$24 sps:$4 sm:$0xff]  }
  0x74   :  { %552 = vmatprep.subr.bf16.mxu0 %v3024_v16  ;;  %v3118_v16 = vld [vmem:[%s4491_s7 + $0x9c] ss:$24 sps:$4 sm:$0xff]  }
  0x77   :  { %553 = vmatpush1.bf16.msra.mxu0 %v3022_v17  ;;  %v3116_v17 = vld [vmem:[%s4491_s7 + $0x98] ss:$24 sps:$4 sm:$0xff]  }
  0x78   :  { %554 = vmatprep.subr.bf16.mxu0 %v3027_v19  ;;  %v3124_v19 = vld [vmem:[%s4491_s7 + $0xcc] ss:$24 sps:$4 sm:$0xff]  }
  0x7b   :  { %555 = vmatpush1.bf16.msra.mxu0 %v3025_v20  ;;  %v3122_v20 = vld [vmem:[%s4491_s7 + $0xc8] ss:$24 sps:$4 sm:$0xff]  }
  0x7c   :  { %556 = vmatprep.subr.bf16.mxu0 %v3030_v21  ;;  %v3130_v21 = vld [vmem:[%s4491_s7 + $0xfc] ss:$24 sps:$4 sm:$0xff]  }
  0x7f   :  { %557 = vmatpush1.bf16.msra.mxu0 %v3028_v22  ;;  %v3128_v22 = vld [vmem:[%s4491_s7 + $0xf8] ss:$24 sps:$4 sm:$0xff]  }
  0x80   :  { %2878 = vmatprep.subr.bf16.mxu0 %v3031_v23  ;;  %v3136_v23 = vld [vmem:[%s4491_s7 + $0x12c] ss:$24 sps:$4 sm:$0xff]  }
  0x82   :  { %559 = vmatmul.mubr.bf16.vlgmr.msra.gmra.mrb[0].mxu0 %v88_v25  ;;  %v3142_v25 = vld [vmem:[%s4491_s7 + $0x15c] ss:$24 sps:$4 sm:$0xff]  }
  0x83   :  { %2879 = vmatpush3.bf16.msra.mxu0 %v3032_v24  ;;  %v3134_v24 = vld [vmem:[%s4491_s7 + $0x128] ss:$24 sps:$4 sm:$0xff]  }
  0x84   :  { %2880 = vmatprep.subr.bf16.mxu0 %v3033_v26  ;;  %v3140_v26 = vld [vmem:[%s4491_s7 + $0x158] ss:$24 sps:$4 sm:$0xff]  }
  0x87   :  { %2881 = vmatpush3.bf16.msra.mxu0 %v3034_v27  ;;  %v3148_v27 = vld [vmem:[%s4491_s7 + $0x18c] ss:$24 sps:$4 sm:$0xff]  }
  0x88   :  { %2882 = vmatprep.subr.bf16.mxu0 %v3035_v28  ;;  %v3146_v28 = vld [vmem:[%s4491_s7 + $0x188] ss:$24 sps:$4 sm:$0xff]  }
  0x8b   :  { %2883 = vmatpush3.bf16.msra.mxu0 %v3036_v29  ;;  %v3154_v29 = vld [vmem:[%s4491_s7 + $0x1bc] ss:$24 sps:$4 sm:$0xff]  }
  0x8c   :  { %2884 = vmatprep.subr.bf16.mxu0 %v3037_v30  ;;  %v3152_v30 = vld [vmem:[%s4491_s7 + $0x1b8] ss:$24 sps:$4 sm:$0xff]  }
  0x8f   :  { %2885 = vmatpush3.bf16.msra.mxu0 %v3038_v31  ;;  %v3160_v31 = vld [vmem:[%s4491_s7 + $0x1ec] ss:$24 sps:$4 sm:$0xff]  }
  0x90   :  { %2886 = vmatprep.subr.bf16.mxu0 %v3039_v32  ;;  %v3158_v32 = vld [vmem:[%s4491_s7 + $0x1e8] ss:$24 sps:$4 sm:$0xff]  }
  0x93   :  { %2887 = vmatpush3.bf16.msra.mxu0 %v3040_v33  ;;  %v3166_v33 = vld [vmem:[%s4491_s7 + $0x21c] ss:$24 sps:$4 sm:$0xff]  }
  0x94   :  { %2888 = vmatprep.subr.bf16.mxu0 %v3041_v34  ;;  %v3164_v34 = vld [vmem:[%s4491_s7 + $0x218] ss:$24 sps:$4 sm:$0xff]  }
  0x97   :  { %2889 = vmatpush3.bf16.msra.mxu0 %v3042_v35  ;;  %v3172_v35 = vld [vmem:[%s4491_s7 + $0x24c] ss:$24 sps:$4 sm:$0xff]  }
  0x98   :  { %2890 = vmatprep.subr.bf16.mxu0 %v3043_v36  ;;  %v3170_v36 = vld [vmem:[%s4491_s7 + $0x248] ss:$24 sps:$4 sm:$0xff]  }
  0x9b   :  { %2891 = vmatpush3.bf16.msra.mxu0 %v3044_v37  ;;  %v3178_v37 = vld [vmem:[%s4491_s7 + $0x27c] ss:$24 sps:$4 sm:$0xff]  }
  0x9c   :  { %2892 = vmatprep.subr.bf16.mxu0 %v3045_v38  ;;  %v3176_v38 = vld [vmem:[%s4491_s7 + $0x278] ss:$24 sps:$4 sm:$0xff]  }
  0x9f   :  { %2893 = vmatpush3.bf16.msra.mxu0 %v3046_v39 }
  0xa0   :  { %2315 = vmatprep.subr.bf16.mxu0 %v3100_v10  ;;  %v3119_v10 = vld [vmem:[%s4491_s7 + $0xc0] ss:$24 sps:$4 sm:$0xff]  }
 0x155   :  { %v560_v57 = vpop.f32.mrb[0].mxu0 }
 0x156   :  { %v2900_v58 = vadd.f32 %v560_v57, %v158_v55  ;;  %v562_v59 = vpop.f32.mrb[1].mxu0  ;;  %v3082_v55 = vld [vmem:[%s4489_s5 + $0x6c] ss:$16 sps:$4 sm:$0xff]  }
 0x157   :  { %v2901_v60 = vadd.f32 %v562_v59, %v162_v56  ;;  %v564_v61 = vpop.f32.mrb[2].mxu0  ;;  %v3080_v56 = vld [vmem:[%s4489_s5 + $0x68] ss:$16 sps:$4 sm:$0xff]   ;;  %v3085_v57 = vld [vmem:[%s4489_s5 + $0x8c] ss:$16 sps:$4 sm:$0xff]  }
 0x158   :  { %v567_v62 = vmax.f32 %v2900_v58, 0.0  ;;  %v565_v63 = vpop.f32.mrb[3].mxu0  ;;  %v3083_v58 = vld [vmem:[%s4489_s5 + $0x88] ss:$16 sps:$4 sm:$0xff]   ;;  %v3088_v59 = vld [vmem:[%s4489_s5 + $0xac] ss:$16 sps:$4 sm:$0xff]  }
 0x159   :  { %v568_v0 = vmax.f32 %v2901_v60, 0.0  ;;  %v3086_v60 = vld [vmem:[%s4489_s5 + $0xa8] ss:$16 sps:$4 sm:$0xff]   ;;  %v3091_v61 = vld [vmem:[%s4489_s5 + $0xcc] ss:$16 sps:$4 sm:$0xff]  }
 0x15a   :  { %v569_v2 = vpack.c.bf16 %v567_v62, %v567_v62  ;;  %v3089_v62 = vld [vmem:[%s4489_s5 + $0xc8] ss:$16 sps:$4 sm:$0xff]   ;;  %v3094_v63 = vld [vmem:[%s4489_s5 + $0xec] ss:$16 sps:$4 sm:$0xff]  }
 0x15b   :  { %v570_v1 = vpack.c.bf16 %v568_v0, %v568_v0  ;;  %v3092_v0 = vld [vmem:[%s4489_s5 + $0xe8] ss:$16 sps:$4 sm:$0xff]  }
 0x15d   :  { %737 = vmatprep.mubr.bf16.mxu0 %v570_v1  ;;  %v3097_v1 = vld [vmem:[%s4491_s7 + $0x4] ss:$24 sps:$4 sm:$0xff]  }
 0x15e   :  { %738 = vmatmul.mubr.bf16.vlgmr.msra.gmra.mrb[4].mxu0 %v569_v2  ;;  %v3095_v2 = vld [vmem:[%s4491_s7] ss:$24 sps:$4 sm:$0xff]  }
 0x15f   :  { %2316 = vmatpush1.bf16.msra.mxu0 %v3098_v9  ;;  %v3121_v9 = vld [vmem:[%s4491_s7 + $0xc4] ss:$24 sps:$4 sm:$0xff]  }
 0x160   :  { %2317 = vmatprep.subr.bf16.mxu0 %v3106_v11  ;;  %v3127_v11 = vld [vmem:[%s4491_s7 + $0xf4] ss:$24 sps:$4 sm:$0xff]  }
 0x163   :  { %2318 = vmatpush1.bf16.msra.mxu0 %v3104_v12  ;;  %v3125_v12 = vld [vmem:[%s4491_s7 + $0xf0] ss:$24 sps:$4 sm:$0xff]  }
 0x164   :  { %2319 = vmatprep.subr.bf16.mxu0 %v3112_v13  ;;  %v3133_v13 = vld [vmem:[%s4491_s7 + $0x124] ss:$24 sps:$4 sm:$0xff]  }
 0x167   :  { %2320 = vmatpush1.bf16.msra.mxu0 %v3110_v14  ;;  %v3131_v14 = vld [vmem:[%s4491_s7 + $0x120] ss:$24 sps:$4 sm:$0xff]  }
 0x168   :  { %2321 = vmatprep.subr.bf16.mxu0 %v3118_v16  ;;  %v3139_v16 = vld [vmem:[%s4491_s7 + $0x154] ss:$24 sps:$4 sm:$0xff]  }
 0x16b   :  { %2322 = vmatpush1.bf16.msra.mxu0 %v3116_v17  ;;  %v3137_v17 = vld [vmem:[%s4491_s7 + $0x150] ss:$24 sps:$4 sm:$0xff]  }
 0x16c   :  { %2323 = vmatprep.subr.bf16.mxu0 %v3124_v19  ;;  %v3145_v19 = vld [vmem:[%s4491_s7 + $0x184] ss:$24 sps:$4 sm:$0xff]  }
 0x16f   :  { %2324 = vmatpush1.bf16.msra.mxu0 %v3122_v20  ;;  %v3143_v20 = vld [vmem:[%s4491_s7 + $0x180] ss:$24 sps:$4 sm:$0xff]  }
 0x170   :  { %2325 = vmatprep.subr.bf16.mxu0 %v3130_v21  ;;  %v3151_v21 = vld [vmem:[%s4491_s7 + $0x1b4] ss:$24 sps:$4 sm:$0xff]  }
 0x173   :  { %2326 = vmatpush1.bf16.msra.mxu0 %v3128_v22  ;;  %v3149_v22 = vld [vmem:[%s4491_s7 + $0x1b0] ss:$24 sps:$4 sm:$0xff]  }
 0x174   :  { %2327 = vmatprep.subr.bf16.mxu0 %v3136_v23  ;;  %v3157_v23 = vld [vmem:[%s4491_s7 + $0x1e4] ss:$24 sps:$4 sm:$0xff]  }
 0x177   :  { %2328 = vmatpush1.bf16.msra.mxu0 %v3134_v24  ;;  %v3155_v24 = vld [vmem:[%s4491_s7 + $0x1e0] ss:$24 sps:$4 sm:$0xff]  }
 0x178   :  { %2329 = vmatprep.subr.bf16.mxu0 %v3142_v25  ;;  %v3163_v25 = vld [vmem:[%s4491_s7 + $0x214] ss:$24 sps:$4 sm:$0xff]  }
 0x17b   :  { %2330 = vmatpush1.bf16.msra.mxu0 %v3140_v26  ;;  %v3161_v26 = vld [vmem:[%s4491_s7 + $0x210] ss:$24 sps:$4 sm:$0xff]  }
 0x17c   :  { %2331 = vmatprep.subr.bf16.mxu0 %v3148_v27  ;;  %v3169_v27 = vld [vmem:[%s4491_s7 + $0x244] ss:$24 sps:$4 sm:$0xff]  }
 0x17f   :  { %2332 = vmatpush1.bf16.msra.mxu0 %v3146_v28  ;;  %v3167_v28 = vld [vmem:[%s4491_s7 + $0x240] ss:$24 sps:$4 sm:$0xff]  }
 0x180   :  { %2333 = vmatprep.subr.bf16.mxu0 %v3154_v29  ;;  %v3175_v29 = vld [vmem:[%s4491_s7 + $0x274] ss:$24 sps:$4 sm:$0xff]  }
 0x183   :  { %2334 = vmatpush1.bf16.msra.mxu0 %v3152_v30  ;;  %v3173_v30 = vld [vmem:[%s4491_s7 + $0x270] ss:$24 sps:$4 sm:$0xff]  }
 0x184   :  { %2335 = vmatprep.subr.bf16.mxu0 %v3160_v31  ;;  %v3181_v31 = vld [vmem:[%s4491_s7 + $0x2a4] ss:$24 sps:$4 sm:$0xff]  }
 0x187   :  { %2336 = vmatpush1.bf16.msra.mxu0 %v3158_v32  ;;  %v3184_v32 = vld [vmem:[%s4491_s7 + $0x2ac] ss:$24 sps:$4 sm:$0xff]  }
 0x188   :  { %2337 = vmatprep.subr.bf16.mxu0 %v3166_v33  ;;  %v3182_v33 = vld [vmem:[%s4491_s7 + $0x2a8] ss:$24 sps:$4 sm:$0xff]  }
 0x18b   :  { %2338 = vmatpush1.bf16.msra.mxu0 %v3164_v34  ;;  %v3179_v34 = vld [vmem:[%s4491_s7 + $0x2a0] ss:$24 sps:$4 sm:$0xff]  }
 0x18c   :  { %2339 = vmatprep.subr.bf16.mxu0 %v3172_v35  ;;  %v3187_v35 = vld [vmem:[%s4491_s7 + $0x2d4] ss:$24 sps:$4 sm:$0xff]  }
 0x18f   :  { %2340 = vmatpush1.bf16.msra.mxu0 %v3170_v36  ;;  %v3190_v36 = vld [vmem:[%s4491_s7 + $0x2dc] ss:$24 sps:$4 sm:$0xff]  }
 0x190   :  { %2341 = vmatprep.subr.bf16.mxu0 %v3178_v37  ;;  %v3188_v37 = vld [vmem:[%s4491_s7 + $0x2d8] ss:$24 sps:$4 sm:$0xff]  }
 0x193   :  { %2342 = vmatpush1.bf16.msra.mxu0 %v3176_v38  ;;  %v3185_v38 = vld [vmem:[%s4491_s7 + $0x2d0] ss:$24 sps:$4 sm:$0xff]  }
 0x194   :  { %2343 = vmatprep.subr.bf16.mxu0 %v3184_v32  ;;  %v3244_v32 = vld [vmem:[%s4491_s7 + $0x48c] ss:$24 sps:$4 sm:$0xff]  }
 0x197   :  { %2344 = vmatpush1.bf16.msra.mxu0 %v3182_v33 }
 0x198   :  { %2345 = vmatprep.subr.bf16.mxu0 %v3190_v36  ;;  %v3242_v36 = vld [vmem:[%s4491_s7 + $0x488] ss:$24 sps:$4 sm:$0xff]  }
 0x19b   :  { %2346 = vmatpush1.bf16.msra.mxu0 %v3188_v37  ;;  %v3247_v37 = vld [vmem:[%s4491_s7 + $0x4b4] ss:$24 sps:$4 sm:$0xff]  }
 0x231   :  { %v2894_v39 = vpop.f32.mrb[4].mxu0 }
 0x232   :  { %v2895_v41 = vpop.f32.mrb[5].mxu0 }
 0x233   :  { %v2896_v42 = vadd.f32 %v2895_v41, %v2894_v39  ;;  %v2897_v43 = vpop.f32.mrb[6].mxu0  ;;  %v3193_v39 = vld [vmem:[%s4491_s7 + $0x304] ss:$24 sps:$4 sm:$0xff]   ;;  %v4040_v41 = vld [vmem:[%s4490_s6] sm:$0xf] }
 0x234   :  { %v2898_v44 = vpop.f32.mrb[7].mxu0  ;;  %v787_v43 = vrot.slane %v4040_v41, %v3770_v54 }
 0x235   :  { %v740_v45 = vadd.f32 %v2896_v42, %v2635_v40  ;;  %v3196_v40 = vld [vmem:[%s4491_s7 + $0x30c] ss:$24 sps:$4 sm:$0xff]   ;;  %v783_v42 = vrot.slane %v4040_v41, %v3764_v52 }
 0x236   :  { %2356 = vmatprep.subr.bf16.mxu0 %v3196_v40  ;;  %v3248_v40 = vld [vmem:[%s4491_s7 + $0x4b8] ss:$24 sps:$4 sm:$0xff]  }
 0x237   :  { %v745_v46 = vmax.f32 %v740_v45, 0.0 }
 0x239   :  { %v746_v48 = vpack.c.bf16 %v745_v46, %v745_v46 }
 0x23b   :  { %993 = vmatmul.mubr.bf16.vlgmr.msra.gmra.mrb[0].mxu1 %v746_v48 }
 0x23c   :  { %1002 = vmatpush1.bf16.msra.mxu1 %v3071_v47  ;;  %1033 = vmatprep.mubr.bf16.mxu1 %v3408_v8  ;;  %v3113_v8 = vld [vmem:[%s4491_s7 + $0x90] ss:$24 sps:$4 sm:$0xff]  }
 0x23d   :  { %1003 = vmatprep.subr.bf16.mxu1 %v3076_v49 }
 0x240   :  { %1004 = vmatpush1.bf16.msra.mxu1 %v3074_v50 }
 0x241   :  { %1005 = vmatprep.subr.bf16.mxu1 %v3079_v51 }
 0x244   :  { %1006 = vmatpush1.bf16.msra.mxu1 %v3077_v53 }
 0x245   :  { %1007 = vmatprep.subr.bf16.mxu1 %v3082_v55  ;;  %v3191_v55 = vld [vmem:[%s4491_s7 + $0x300] ss:$24 sps:$4 sm:$0xff]  }
 0x248   :  { %1008 = vmatpush1.bf16.msra.mxu1 %v3080_v56  ;;  %v3194_v56 = vld [vmem:[%s4491_s7 + $0x308] ss:$24 sps:$4 sm:$0xff]  }
 0x249   :  { %1009 = vmatprep.subr.bf16.mxu1 %v3085_v57 }
 0x24c   :  { %1010 = vmatpush1.bf16.msra.mxu1 %v3083_v58  ;;  %v3199_v58 = vld [vmem:[%s4491_s7 + $0x334] ss:$24 sps:$4 sm:$0xff]  }
 0x24d   :  { %1011 = vmatprep.subr.bf16.mxu1 %v3088_v59  ;;  %v3202_v59 = vld [vmem:[%s4491_s7 + $0x33c] ss:$24 sps:$4 sm:$0xff]  }
 0x250   :  { %1012 = vmatpush1.bf16.msra.mxu1 %v3086_v60  ;;  %v3197_v60 = vld [vmem:[%s4491_s7 + $0x330] ss:$24 sps:$4 sm:$0xff]  }
 0x251   :  { %1013 = vmatprep.subr.bf16.mxu1 %v3091_v61  ;;  %v3200_v61 = vld [vmem:[%s4491_s7 + $0x338] ss:$24 sps:$4 sm:$0xff]  }
 0x254   :  { %1014 = vmatpush1.bf16.msra.mxu1 %v3089_v62  ;;  %v3205_v62 = vld [vmem:[%s4491_s7 + $0x364] ss:$24 sps:$4 sm:$0xff]  }
 0x255   :  { %1015 = vmatprep.subr.bf16.mxu1 %v3094_v63  ;;  %v3208_v63 = vld [vmem:[%s4491_s7 + $0x36c] ss:$24 sps:$4 sm:$0xff]  }
 0x258   :  { %1016 = vmatpush1.bf16.msra.mxu1 %v3092_v0  ;;  %v3203_v0 = vld [vmem:[%s4491_s7 + $0x360] ss:$24 sps:$4 sm:$0xff]  }
 0x259   :  { %2233 = vmatprep.subr.bf16.mxu1 %v3097_v1  ;;  %v3206_v1 = vld [vmem:[%s4491_s7 + $0x368] ss:$24 sps:$4 sm:$0xff]  }
 0x25b   :  { %1034 = vmatmul.mubr.bf16.vlgmr.msra.gmra.mrb[4].mxu1 %v746_v48 }
 0x25c   :  { %2234 = vmatpush1.bf16.msra.mxu1 %v3095_v2  ;;  %v3211_v2 = vld [vmem:[%s4491_s7 + $0x394] ss:$24 sps:$4 sm:$0xff]  }
 0x25d   :  { %2235 = vmatprep.subr.bf16.mxu1 %v3103_v3  ;;  %v3214_v3 = vld [vmem:[%s4491_s7 + $0x39c] ss:$24 sps:$4 sm:$0xff]  }
 0x260   :  { %2236 = vmatpush1.bf16.msra.mxu1 %v3101_v4  ;;  %v3209_v4 = vld [vmem:[%s4491_s7 + $0x390] ss:$24 sps:$4 sm:$0xff]  }
 0x261   :  { %2237 = vmatprep.subr.bf16.mxu1 %v3109_v5  ;;  %v3212_v5 = vld [vmem:[%s4491_s7 + $0x398] ss:$24 sps:$4 sm:$0xff]  }
 0x264   :  { %2238 = vmatpush1.bf16.msra.mxu1 %v3107_v6  ;;  %v3217_v6 = vld [vmem:[%s4491_s7 + $0x3c4] ss:$24 sps:$4 sm:$0xff]  }
 0x265   :  { %2239 = vmatprep.subr.bf16.mxu1 %v3115_v7  ;;  %v3220_v7 = vld [vmem:[%s4491_s7 + $0x3cc] ss:$24 sps:$4 sm:$0xff]  }
 0x268   :  { %2240 = vmatpush1.bf16.msra.mxu1 %v3113_v8  ;;  %v3215_v8 = vld [vmem:[%s4491_s7 + $0x3c0] ss:$24 sps:$4 sm:$0xff]  }
 0x269   :  { %2241 = vmatprep.subr.bf16.mxu1 %v3121_v9  ;;  %v3218_v9 = vld [vmem:[%s4491_s7 + $0x3c8] ss:$24 sps:$4 sm:$0xff]  }
 0x26c   :  { %2242 = vmatpush1.bf16.msra.mxu1 %v3119_v10  ;;  %v3223_v10 = vld [vmem:[%s4491_s7 + $0x3f4] ss:$24 sps:$4 sm:$0xff]  }
 0x26d   :  { %2243 = vmatprep.subr.bf16.mxu1 %v3127_v11  ;;  %v3226_v11 = vld [vmem:[%s4491_s7 + $0x3fc] ss:$24 sps:$4 sm:$0xff]  }
 0x270   :  { %2244 = vmatpush1.bf16.msra.mxu1 %v3125_v12  ;;  %v3221_v12 = vld [vmem:[%s4491_s7 + $0x3f0] ss:$24 sps:$4 sm:$0xff]  }
 0x271   :  { %2245 = vmatprep.subr.bf16.mxu1 %v3133_v13  ;;  %v3224_v13 = vld [vmem:[%s4491_s7 + $0x3f8] ss:$24 sps:$4 sm:$0xff]  }
 0x274   :  { %2246 = vmatpush1.bf16.msra.mxu1 %v3131_v14  ;;  %v794_v14 = vsub.s32 3, %v3495_v15 }
 0x275   :  { %2247 = vmatprep.subr.bf16.mxu1 %v3139_v16  ;;  %v3229_v16 = vld [vmem:[%s4491_s7 + $0x424] ss:$24 sps:$4 sm:$0xff]  }
 0x278   :  { %2248 = vmatpush1.bf16.msra.mxu1 %v3137_v17  ;;  %v3232_v17 = vld [vmem:[%s4491_s7 + $0x42c] ss:$24 sps:$4 sm:$0xff]  }
 0x279   :  { %2249 = vmatprep.subr.bf16.mxu1 %v3145_v19  ;;  %v795_v19 = vrot.slane %v4040_v41, %v794_v14 }
 0x27c   :  { %2250 = vmatpush1.bf16.msra.mxu1 %v3143_v20  ;;  %v3227_v20 = vld [vmem:[%s4491_s7 + $0x420] ss:$24 sps:$4 sm:$0xff]  }
 0x27d   :  { %2251 = vmatprep.subr.bf16.mxu1 %v3151_v21  ;;  %v3230_v21 = vld [vmem:[%s4491_s7 + $0x428] ss:$24 sps:$4 sm:$0xff]  }
 0x280   :  { %2252 = vmatpush1.bf16.msra.mxu1 %v3149_v22  ;;  %v3235_v22 = vld [vmem:[%s4491_s7 + $0x454] ss:$24 sps:$4 sm:$0xff]  }
 0x281   :  { %2253 = vmatprep.subr.bf16.mxu1 %v3157_v23  ;;  %v3238_v23 = vld [vmem:[%s4491_s7 + $0x45c] ss:$24 sps:$4 sm:$0xff]  }
 0x284   :  { %2254 = vmatpush1.bf16.msra.mxu1 %v3155_v24 }
 0x285   :  { %2255 = vmatprep.subr.bf16.mxu1 %v3163_v25 }
 0x288   :  { %2256 = vmatpush1.bf16.msra.mxu1 %v3161_v26 }
 0x289   :  { %2257 = vmatprep.subr.bf16.mxu1 %v3169_v27 }
 0x28c   :  { %2258 = vmatpush1.bf16.msra.mxu1 %v3167_v28  ;;  %v3233_v28 = vld [vmem:[%s4491_s7 + $0x450] ss:$24 sps:$4 sm:$0xff]  }
 0x28d   :  { %2259 = vmatprep.subr.bf16.mxu1 %v3175_v29  ;;  %v3236_v29 = vld [vmem:[%s4491_s7 + $0x458] ss:$24 sps:$4 sm:$0xff]  }
 0x290   :  { %2260 = vmatpush1.bf16.msra.mxu1 %v3173_v30 }
 0x291   :  { %2261 = vmatprep.subr.bf16.mxu1 %v3181_v31  ;;  %v3241_v31 = vld [vmem:[%s4491_s7 + $0x484] ss:$24 sps:$4 sm:$0xff]  }
 0x294   :  { %2262 = vmatpush1.bf16.msra.mxu1 %v3179_v34 }
 0x295   :  { %2263 = vmatprep.subr.bf16.mxu1 %v3187_v35  ;;  %v3239_v35 = vld [vmem:[%s4491_s7 + $0x480] ss:$24 sps:$4 sm:$0xff]  }
 0x298   :  { %2264 = vmatpush1.bf16.msra.mxu1 %v3185_v38  ;;  %v3250_v38 = vld [vmem:[%s4491_s7 + $0x4bc] ss:$24 sps:$4 sm:$0xff]  }
 0x299   :  { %2274 = vmatprep.subr.bf16.mxu1 %v3193_v39  ;;  %v3245_v39 = vld [vmem:[%s4491_s7 + $0x4b0] ss:$24 sps:$4 sm:$0xff]  }
 0x30e   :  { %v994_v44 = vpop.f32.mrb[0].mxu1 }
 0x30f   :  { %v995_v45 = vadd.f32 %v994_v44, %v783_v42  ;;  %v996_v46 = vpop.f32.mrb[1].mxu1  ;;  %v3253_v42 = vld [vmem:[%s4491_s7 + $0x4e4] ss:$24 sps:$4 sm:$0xff]   ;;  %v3251_v44 = vld [vmem:[%s4491_s7 + $0x4e0] ss:$24 sps:$4 sm:$0xff]  }
 0x310   :  { %v997_v47 = vadd.f32 %v996_v46, %v787_v43  ;;  %v998_v48 = vpop.f32.mrb[2].mxu1  ;;  %v3256_v43 = vld [vmem:[%s4491_s7 + $0x4ec] ss:$24 sps:$4 sm:$0xff]  }
 0x311   :  { %v1042_v49 = vmax.f32 %v995_v45, 0.0  ;;  %v999_v50 = vpop.f32.mrb[3].mxu1  ;;  %v3254_v45 = vld [vmem:[%s4491_s7 + $0x4e8] ss:$24 sps:$4 sm:$0xff]   ;;  %v3259_v46 = vld [vmem:[%s4491_s7 + $0x514] ss:$24 sps:$4 sm:$0xff]  }
 0x312   :  { %v1043_v51 = vmax.f32 %v997_v47, 0.0  ;;  %v3262_v47 = vld [vmem:[%s4491_s7 + $0x51c] ss:$24 sps:$4 sm:$0xff]   ;;  %v3257_v48 = vld [vmem:[%s4491_s7 + $0x510] ss:$24 sps:$4 sm:$0xff]  }
 0x313   :  { %v4054_v57 = vpack.c.bf16 %v1042_v49, %v1042_v49  ;;  %v3260_v49 = vld [vmem:[%s4491_s7 + $0x518] ss:$24 sps:$4 sm:$0xff]   ;;  %v3265_v50 = vld [vmem:[%s4491_s7 + $0x544] ss:$24 sps:$4 sm:$0xff]  }
 0x314   :  { %v4046_v53 = vpack.c.bf16 %v1043_v51, %v1043_v51  ;;  %v3268_v51 = vld [vmem:[%s4491_s7 + $0x54c] ss:$24 sps:$4 sm:$0xff]  }
 0x316   :  { %2265 = vmatprep.mubr.bf16.mxu1 %v4046_v53  ;;  %2347 = vmatprep.mubr.bf16.mxu0 %v4046_v53 }
 0x317   :  { %2266 = vmatmul.mubr.bf16.vlgmr.msra.gmra.mrb[8].mxu1 %v4054_v57  ;;  %2348 = vmatmul.mubr.bf16.vlgmr.msra.gmra.mrb[8].mxu0 %v4054_v57 }
 0x318   :  { %2275 = vmatpush1.bf16.msra.mxu1 %v3191_v55  ;;  %2357 = vmatpush1.bf16.msra.mxu0 %v3194_v56  ;;  %v3263_v55 = vld [vmem:[%s4491_s7 + $0x540] ss:$24 sps:$4 sm:$0xff]  }
 0x319   :  { %2276 = vmatprep.subr.bf16.mxu1 %v3199_v58  ;;  %2358 = vmatprep.subr.bf16.mxu0 %v3202_v59  ;;  %v3266_v56 = vld [vmem:[%s4491_s7 + $0x548] ss:$24 sps:$4 sm:$0xff]   ;;  %v790_v58 = vsub.s32 2, %v3495_v15  ;;  %v3271_v59 = vld [vmem:[%s4491_s7 + $0x574] ss:$24 sps:$4 sm:$0xff]  }
 0x31c   :  { %2277 = vmatpush1.bf16.msra.mxu1 %v3197_v60  ;;  %2359 = vmatpush1.bf16.msra.mxu0 %v3200_v61  ;;  %v3274_v60 = vld [vmem:[%s4491_s7 + $0x57c] ss:$24 sps:$4 sm:$0xff]   ;;  %v3269_v61 = vld [vmem:[%s4491_s7 + $0x570] ss:$24 sps:$4 sm:$0xff]  }
 0x31d   :  { %2278 = vmatprep.subr.bf16.mxu1 %v3205_v62  ;;  %2360 = vmatprep.subr.bf16.mxu0 %v3208_v63  ;;  %v3272_v62 = vld [vmem:[%s4491_s7 + $0x578] ss:$24 sps:$4 sm:$0xff]   ;;  %v791_v63 = vrot.slane %v4040_v41, %v790_v58  ;;  %v3278_v41 = vld [vmem:[%s4491_s7 + $0x5a8] ss:$24 sps:$4 sm:$0xff]  }
 0x320   :  { %2279 = vmatpush1.bf16.msra.mxu1 %v3203_v0  ;;  %2361 = vmatpush1.bf16.msra.mxu0 %v3206_v1  ;;  %v3277_v0 = vld [vmem:[%s4491_s7 + $0x5a4] ss:$24 sps:$4 sm:$0xff]  }
 0x321   :  { %2280 = vmatprep.subr.bf16.mxu1 %v3211_v2  ;;  %2362 = vmatprep.subr.bf16.mxu0 %v3214_v3  ;;  %v3280_v1 = vld [vmem:[%s4491_s7 + $0x5ac] ss:$24 sps:$4 sm:$0xff]   ;;  %v3275_v2 = vld [vmem:[%s4491_s7 + $0x5a0] ss:$24 sps:$4 sm:$0xff]  }
 0x324   :  { %2281 = vmatpush1.bf16.msra.mxu1 %v3209_v4  ;;  %2363 = vmatpush1.bf16.msra.mxu0 %v3212_v5  ;;  %v3283_v4 = vld [vmem:[%s4491_s7 + $0x5d4] ss:$24 sps:$4 sm:$0xff]  }
 0x325   :  { %2282 = vmatprep.subr.bf16.mxu1 %v3217_v6  ;;  %2364 = vmatprep.subr.bf16.mxu0 %v3220_v7  ;;  %v3286_v5 = vld [vmem:[%s4491_s7 + $0x5dc] ss:$24 sps:$4 sm:$0xff]   ;;  %v3281_v6 = vld [vmem:[%s4491_s7 + $0x5d0] ss:$24 sps:$4 sm:$0xff]  }
 0x326   :  { %v3284_v7 = vld [vmem:[%s4491_s7 + $0x5d8] ss:$24 sps:$4 sm:$0xff]  }
 0x328   :  { %2283 = vmatpush1.bf16.msra.mxu1 %v3215_v8  ;;  %2365 = vmatpush1.bf16.msra.mxu0 %v3218_v9  ;;  %v3289_v9 = vld [vmem:[%s4491_s7 + $0x14] ss:$24 sps:$4 sm:$0xff]  }
 0x329   :  { %2284 = vmatprep.subr.bf16.mxu1 %v3223_v10  ;;  %2366 = vmatprep.subr.bf16.mxu0 %v3226_v11  ;;  %v3287_v10 = vld [vmem:[%s4491_s7 + $0x10] ss:$24 sps:$4 sm:$0xff]  }
 0x32c   :  { %2285 = vmatpush1.bf16.msra.mxu1 %v3221_v12  ;;  %2367 = vmatpush1.bf16.msra.mxu0 %v3224_v13  ;;  %v3292_v12 = vld [vmem:[%s4491_s7 + $0x44] ss:$24 sps:$4 sm:$0xff]   ;;  %v3290_v13 = vld [vmem:[%s4491_s7 + $0x40] ss:$24 sps:$4 sm:$0xff]  }
 0x32d   :  { %2286 = vmatprep.subr.bf16.mxu1 %v3229_v16  ;;  %2368 = vmatprep.subr.bf16.mxu0 %v3232_v17  ;;  %v3295_v16 = vld [vmem:[%s4491_s7 + $0x74] ss:$24 sps:$4 sm:$0xff]   ;;  %v3293_v17 = vld [vmem:[%s4491_s7 + $0x70] ss:$24 sps:$4 sm:$0xff]  }
 0x32e   :  { %v4142_v24 = vpop.f32.mrb[4].mxu1 }
 0x32f   :  { %v1037_v25 = vpop.f32.mrb[5].mxu1  ;;  %v1036_v3 = vadd.f32 %v4142_v24, %v791_v63  ;;  %v3307_v24 = vld [vmem:[%s4491_s7 + $0x134] ss:$24 sps:$4 sm:$0xff]   ;;  %v3358_v63 = vld [vmem:[%s4491_s7 + $0x464] ss:$24 sps:$4 sm:$0xff]  }
 0x330   :  { %v1038_v26 = vadd.f32 %v1037_v25, %v795_v19  ;;  %v1039_v27 = vpop.f32.mrb[6].mxu1  ;;  %2287 = vmatpush1.bf16.msra.mxu1 %v3227_v20  ;;  %2369 = vmatpush1.bf16.msra.mxu0 %v3230_v21  ;;  %v3298_v19 = vld [vmem:[%s4491_s7 + $0xa4] ss:$24 sps:$4 sm:$0xff]   ;;  %v3301_v20 = vld [vmem:[%s4491_s7 + $0xd4] ss:$24 sps:$4 sm:$0xff]  }
 0x331   :  { %v1040_v30 = vpop.f32.mrb[7].mxu1  ;;  %2288 = vmatprep.subr.bf16.mxu1 %v3235_v22  ;;  %2370 = vmatprep.subr.bf16.mxu0 %v3238_v23  ;;  %v1044_v8 = vmax.f32 %v1036_v3, 0.0  ;;  %v3299_v21 = vld [vmem:[%s4491_s7 + $0xd0] ss:$24 sps:$4 sm:$0xff]   ;;  %v3304_v22 = vld [vmem:[%s4491_s7 + $0x104] ss:$24 sps:$4 sm:$0xff]  }
 0x332   :  { %v1045_v33 = vmax.f32 %v1038_v26, 0.0  ;;  %v3302_v23 = vld [vmem:[%s4491_s7 + $0x100] ss:$24 sps:$4 sm:$0xff]   ;;  %v3305_v25 = vld [vmem:[%s4491_s7 + $0x130] ss:$24 sps:$4 sm:$0xff]  }
 0x333   :  { %v4261_v11 = vpack.c.bf16 %v1044_v8, %v1044_v8  ;;  %v3310_v26 = vld [vmem:[%s4491_s7 + $0x164] ss:$24 sps:$4 sm:$0xff]   ;;  %v3308_v27 = vld [vmem:[%s4491_s7 + $0x160] ss:$24 sps:$4 sm:$0xff]   ;;  %v3373_v8 = vld [vmem:[%s4491_s7 + $0x554] ss:$24 sps:$4 sm:$0xff]  }
 0x334   :  { %v4156_v34 = vpack.c.bf16 %v1045_v33, %v1045_v33  ;;  %2289 = vmatpush1.bf16.msra.mxu1 %v3233_v28  ;;  %2371 = vmatpush1.bf16.msra.mxu0 %v3236_v29  ;;  %v3313_v28 = vld [vmem:[%s4491_s7 + $0x194] ss:$24 sps:$4 sm:$0xff]   ;;  %v3311_v29 = vld [vmem:[%s4491_s7 + $0x190] ss:$24 sps:$4 sm:$0xff]   ;;  %v3316_v30 = vld [vmem:[%s4491_s7 + $0x1c4] ss:$24 sps:$4 sm:$0xff]  }
 0x335   :  { %2290 = vmatprep.subr.bf16.mxu1 %v3241_v31  ;;  %2372 = vmatprep.subr.bf16.mxu0 %v3244_v32  ;;  %v3314_v31 = vld [vmem:[%s4491_s7 + $0x1c0] ss:$24 sps:$4 sm:$0xff]   ;;  %v3319_v32 = vld [vmem:[%s4491_s7 + $0x1f4] ss:$24 sps:$4 sm:$0xff]   ;;  %v3317_v33 = vld [vmem:[%s4491_s7 + $0x1f0] ss:$24 sps:$4 sm:$0xff]  }
 0x336   :  { %2306 = vmatprep.mubr.bf16.mxu1 %v4156_v34  ;;  %2388 = vmatprep.mubr.bf16.mxu0 %v4156_v34  ;;  %v3362_v3 = vld [vmem:[%s4491_s7 + $0x4c0] ss:$24 sps:$4 sm:$0xff]  }
 0x338   :  { %2291 = vmatpush1.bf16.msra.mxu1 %v3239_v35  ;;  %2373 = vmatpush1.bf16.msra.mxu0 %v3242_v36  ;;  %v3322_v35 = vld [vmem:[%s4491_s7 + $0x224] ss:$24 sps:$4 sm:$0xff]   ;;  %v3320_v36 = vld [vmem:[%s4491_s7 + $0x220] ss:$24 sps:$4 sm:$0xff]  }
 0x339   :  { %2292 = vmatprep.subr.bf16.mxu1 %v3247_v37  ;;  %2374 = vmatprep.subr.bf16.mxu0 %v3250_v38  ;;  %v3325_v37 = vld [vmem:[%s4491_s7 + $0x254] ss:$24 sps:$4 sm:$0xff]   ;;  %v3323_v38 = vld [vmem:[%s4491_s7 + $0x250] ss:$24 sps:$4 sm:$0xff]  }
 0x33c   :  { %2293 = vmatpush1.bf16.msra.mxu1 %v3245_v39  ;;  %2375 = vmatpush1.bf16.msra.mxu0 %v3248_v40  ;;  %v3328_v39 = vld [vmem:[%s4491_s7 + $0x284] ss:$24 sps:$4 sm:$0xff]   ;;  %v3326_v40 = vld [vmem:[%s4491_s7 + $0x280] ss:$24 sps:$4 sm:$0xff]  }
 0x33d   :  { %2294 = vmatprep.subr.bf16.mxu1 %v3253_v42  ;;  %2376 = vmatprep.subr.bf16.mxu0 %v3256_v43  ;;  %v3331_v42 = vld [vmem:[%s4491_s7 + $0x2b4] ss:$24 sps:$4 sm:$0xff]   ;;  %v3329_v43 = vld [vmem:[%s4491_s7 + $0x2b0] ss:$24 sps:$4 sm:$0xff]  }
 0x340   :  { %2295 = vmatpush1.bf16.msra.mxu1 %v3251_v44  ;;  %2377 = vmatpush1.bf16.msra.mxu0 %v3254_v45  ;;  %v3334_v44 = vld [vmem:[%s4491_s7 + $0x2e4] ss:$24 sps:$4 sm:$0xff]   ;;  %v3332_v45 = vld [vmem:[%s4491_s7 + $0x2e0] ss:$24 sps:$4 sm:$0xff]  }
 0x341   :  { %2296 = vmatprep.subr.bf16.mxu1 %v3259_v46  ;;  %2378 = vmatprep.subr.bf16.mxu0 %v3262_v47  ;;  %v3337_v46 = vld [vmem:[%s4491_s7 + $0x314] ss:$24 sps:$4 sm:$0xff]   ;;  %v3335_v47 = vld [vmem:[%s4491_s7 + $0x310] ss:$24 sps:$4 sm:$0xff]  }
 0x344   :  { %2297 = vmatpush1.bf16.msra.mxu1 %v3257_v48  ;;  %2379 = vmatpush1.bf16.msra.mxu0 %v3260_v49  ;;  %v3340_v48 = vld [vmem:[%s4491_s7 + $0x344] ss:$24 sps:$4 sm:$0xff]   ;;  %v3338_v49 = vld [vmem:[%s4491_s7 + $0x340] ss:$24 sps:$4 sm:$0xff]  }
 0x345   :  { %2298 = vmatprep.subr.bf16.mxu1 %v3265_v50  ;;  %2380 = vmatprep.subr.bf16.mxu0 %v3268_v51  ;;  %v3343_v50 = vld [vmem:[%s4491_s7 + $0x374] ss:$24 sps:$4 sm:$0xff]   ;;  %v3341_v51 = vld [vmem:[%s4491_s7 + $0x370] ss:$24 sps:$4 sm:$0xff]  }
 0x348   :  { %2299 = vmatpush1.bf16.msra.mxu1 %v3263_v55  ;;  %2381 = vmatpush1.bf16.msra.mxu0 %v3266_v56  ;;  %v3349_v55 = vld [vmem:[%s4491_s7 + $0x3d4] ss:$24 sps:$4 sm:$0xff]   ;;  %v3347_v56 = vld [vmem:[%s4491_s7 + $0x3d0] ss:$24 sps:$4 sm:$0xff]  }
 0x349   :  { %2300 = vmatprep.subr.bf16.mxu1 %v3271_v59  ;;  %2382 = vmatprep.subr.bf16.mxu0 %v3274_v60  ;;  %v3352_v59 = vld [vmem:[%s4491_s7 + $0x404] ss:$24 sps:$4 sm:$0xff]   ;;  %v3350_v60 = vld [vmem:[%s4491_s7 + $0x400] ss:$24 sps:$4 sm:$0xff]  }
 0x34c   :  { %2301 = vmatpush1.bf16.msra.mxu1 %v3269_v61  ;;  %2383 = vmatpush1.bf16.msra.mxu0 %v3272_v62  ;;  %v3355_v61 = vld [vmem:[%s4491_s7 + $0x434] ss:$24 sps:$4 sm:$0xff]   ;;  %v3353_v62 = vld [vmem:[%s4491_s7 + $0x430] ss:$24 sps:$4 sm:$0xff]  }
 0x34d   :  { %2302 = vmatprep.subr.bf16.mxu1 %v3277_v0  ;;  %2384 = vmatprep.subr.bf16.mxu0 %v3280_v1  ;;  %v3356_v0 = vld [vmem:[%s4491_s7 + $0x460] ss:$24 sps:$4 sm:$0xff]   ;;  %v3361_v1 = vld [vmem:[%s4491_s7 + $0x494] ss:$24 sps:$4 sm:$0xff]  }
 0x350   :  { %2303 = vmatpush1.bf16.msra.mxu1 %v3275_v2  ;;  %2385 = vmatpush1.bf16.msra.mxu0 %v3278_v41  ;;  %v3359_v2 = vld [vmem:[%s4491_s7 + $0x490] ss:$24 sps:$4 sm:$0xff]   ;;  %v3364_v41 = vld [vmem:[%s4491_s7 + $0x4c4] ss:$24 sps:$4 sm:$0xff]  }
 0x351   :  { %2304 = vmatprep.subr.bf16.mxu1 %v3283_v4  ;;  %2386 = vmatprep.subr.bf16.mxu0 %v3286_v5  ;;  %v3367_v4 = vld [vmem:[%s4491_s7 + $0x4f4] ss:$24 sps:$4 sm:$0xff]   ;;  %v3365_v5 = vld [vmem:[%s4491_s7 + $0x4f0] ss:$24 sps:$4 sm:$0xff]  }
 0x354   :  { %2305 = vmatpush1.bf16.msra.mxu1 %v3281_v6  ;;  %2387 = vmatpush1.bf16.msra.mxu0 %v3284_v7  ;;  %v3370_v6 = vld [vmem:[%s4491_s7 + $0x524] ss:$24 sps:$4 sm:$0xff]   ;;  %v3368_v7 = vld [vmem:[%s4491_s7 + $0x520] ss:$24 sps:$4 sm:$0xff]  }
 0x355   :  { %2397 = vmatprep.subr.bf16.mxu1 %v3289_v9  ;;  %v3371_v9 = vld [vmem:[%s4491_s7 + $0x550] ss:$24 sps:$4 sm:$0xff]  }
 0x357   :  { %2307 = vmatmul.mubr.bf16.vlgmr.msra.gmra.mrb[8].mxu1 %v4261_v11  ;;  %2389 = vmatmul.mubr.bf16.vlgmr.msra.gmra.mrb[8].mxu0 %v4261_v11 }
 0x358   :  { %2398 = vmatpush1.bf16.msra.mxu1 %v3287_v10  ;;  %2429 = vmatprep.mubr.bf16.mxu1 %v4046_v53  ;;  %v3296_v53 = vld [vmem:[%s4491_s7 + $0xa0] ss:$24 sps:$4 sm:$0xff]   ;;  %v3376_v10 = vld [vmem:[%s4491_s7 + $0x584] ss:$24 sps:$4 sm:$0xff]  }
 0x359   :  { %2399 = vmatprep.subr.bf16.mxu1 %v3292_v12  ;;  %v3374_v12 = vld [vmem:[%s4491_s7 + $0x580] ss:$24 sps:$4 sm:$0xff]  }
 0x35c   :  { %2400 = vmatpush1.bf16.msra.mxu1 %v3290_v13  ;;  %v3379_v13 = vld [vmem:[%s4491_s7 + $0x5b4] ss:$24 sps:$4 sm:$0xff]  }
 0x35d   :  { %2401 = vmatprep.subr.bf16.mxu1 %v3295_v16  ;;  %v3377_v16 = vld [vmem:[%s4491_s7 + $0x5b0] ss:$24 sps:$4 sm:$0xff]  }
 0x360   :  { %2402 = vmatpush1.bf16.msra.mxu1 %v3293_v17  ;;  %v3382_v17 = vld [vmem:[%s4491_s7 + $0x5e4] ss:$24 sps:$4 sm:$0xff]  }
 0x361   :  { %2403 = vmatprep.subr.bf16.mxu1 %v3298_v19  ;;  %v3380_v19 = vld [vmem:[%s4491_s7 + $0x5e0] ss:$24 sps:$4 sm:$0xff]  }
 0x364   :  { %2404 = vmatpush1.bf16.msra.mxu1 %v3296_v53  ;;  %v37_v53 = vld [vmem:[%s4492_s8] sm:$0x3f] }
 0x365   :  { %2405 = vmatprep.subr.bf16.mxu1 %v3301_v20  ;;  %v1246_v20 = vrot.slane %v37_v53, %v3764_v52 }
 0x368   :  { %2406 = vmatpush1.bf16.msra.mxu1 %v3299_v21  ;;  %v1254_v21 = vrot.slane %v37_v53, %v790_v58 }
 0x369   :  { %2407 = vmatprep.subr.bf16.mxu1 %v3304_v22  ;;  %v1250_v22 = vrot.slane %v37_v53, %v3770_v54 }
 0x36c   :  { %2408 = vmatpush1.bf16.msra.mxu1 %v3302_v23  ;;  %v1258_v23 = vrot.slane %v37_v53, %v794_v14 }
 0x36d   :  { %2409 = vmatprep.subr.bf16.mxu1 %v3307_v24 }
 0x370   :  { %2410 = vmatpush1.bf16.msra.mxu1 %v3305_v25 }
 0x371   :  { %2411 = vmatprep.subr.bf16.mxu1 %v3310_v26 }
 0x374   :  { %2412 = vmatpush1.bf16.msra.mxu1 %v3308_v27 }
 0x375   :  { %2413 = vmatprep.subr.bf16.mxu1 %v3313_v28 }
 0x378   :  { %2414 = vmatpush1.bf16.msra.mxu1 %v3311_v29 }
 0x379   :  { %2415 = vmatprep.subr.bf16.mxu1 %v3316_v30 }
 0x37c   :  { %2416 = vmatpush1.bf16.msra.mxu1 %v3314_v31 }
 0x37d   :  { %2417 = vmatprep.subr.bf16.mxu1 %v3319_v32 }
 0x380   :  { %2418 = vmatpush1.bf16.msra.mxu1 %v3317_v33 }
 0x381   :  { %2419 = vmatprep.subr.bf16.mxu1 %v3322_v35 }
 0x384   :  { %2420 = vmatpush1.bf16.msra.mxu1 %v3320_v36 }
 0x385   :  { %2421 = vmatprep.subr.bf16.mxu1 %v3325_v37 }
 0x388   :  { %2422 = vmatpush1.bf16.msra.mxu1 %v3323_v38 }
 0x389   :  { %2423 = vmatprep.subr.bf16.mxu1 %v3328_v39 }
 0x38c   :  { %2424 = vmatpush1.bf16.msra.mxu1 %v3326_v40 }
 0x38d   :  { %2425 = vmatprep.subr.bf16.mxu1 %v3331_v42 }
 0x390   :  { %2426 = vmatpush1.bf16.msra.mxu1 %v3329_v43 }
 0x391   :  { %2427 = vmatprep.subr.bf16.mxu1 %v3334_v44 }
 0x394   :  { %2428 = vmatpush1.bf16.msra.mxu1 %v3332_v45  ;;  %v1261_v45 = vsub.s32 4, %v3495_v15 }
 0x395   :  { %2438 = vmatprep.subr.bf16.mxu1 %v3337_v46  ;;  %v1265_v46 = vsub.s32 5, %v3495_v15 }
 0x397   :  { %2430 = vmatmul.mubr.bf16.vlgmr.msra.gmra.mrb[12].mxu1 %v4054_v57  ;;  %v3346_v57 = vld [vmem:[%s4491_s7 + $0x3a4] ss:$24 sps:$4 sm:$0xff]  }
 0x398   :  { %2439 = vmatpush1.bf16.msra.mxu1 %v3335_v47  ;;  %2470 = vmatprep.mubr.bf16.mxu1 %v4156_v34  ;;  %v3344_v34 = vld [vmem:[%s4491_s7 + $0x3a0] ss:$24 sps:$4 sm:$0xff]   ;;  %v1262_v47 = vrot.slane %v37_v53, %v1261_v45 }
 0x399   :  { %2440 = vmatprep.subr.bf16.mxu1 %v3340_v48  ;;  %v1266_v48 = vrot.slane %v37_v53, %v1265_v46 }
 0x39c   :  { %2441 = vmatpush1.bf16.msra.mxu1 %v3338_v49 }
 0x39d   :  { %2442 = vmatprep.subr.bf16.mxu1 %v3343_v50 }
 0x3a0   :  { %2443 = vmatpush1.bf16.msra.mxu1 %v3341_v51 }
 0x3a1   :  { %2444 = vmatprep.subr.bf16.mxu1 %v3346_v57 }
 0x3a4   :  { %2445 = vmatpush1.bf16.msra.mxu1 %v3344_v34 }
 0x3a5   :  { %2446 = vmatprep.subr.bf16.mxu1 %v3349_v55 }
 0x3a8   :  { %2447 = vmatpush1.bf16.msra.mxu1 %v3347_v56 }
 0x3a9   :  { %2448 = vmatprep.subr.bf16.mxu1 %v3352_v59 }
 0x3ac   :  { %2449 = vmatpush1.bf16.msra.mxu1 %v3350_v60 }
 0x3ad   :  { %2450 = vmatprep.subr.bf16.mxu1 %v3355_v61 }
 0x3b0   :  { %2451 = vmatpush1.bf16.msra.mxu1 %v3353_v62 }
 0x3b1   :  { %2452 = vmatprep.subr.bf16.mxu1 %v3358_v63 }
 0x3b4   :  { %2453 = vmatpush1.bf16.msra.mxu1 %v3356_v0 }
 0x3b5   :  { %2454 = vmatprep.subr.bf16.mxu1 %v3361_v1 }
 0x3b8   :  { %2455 = vmatpush1.bf16.msra.mxu1 %v3359_v2 }
 0x3b9   :  { %2456 = vmatprep.subr.bf16.mxu1 %v3364_v41 }
 0x3bc   :  { %2457 = vmatpush1.bf16.msra.mxu1 %v3362_v3 }
 0x3bd   :  { %2458 = vmatprep.subr.bf16.mxu1 %v3367_v4 }
 0x3c0   :  { %2459 = vmatpush1.bf16.msra.mxu1 %v3365_v5 }
 0x3c1   :  { %2460 = vmatprep.subr.bf16.mxu1 %v3370_v6 }
 0x3c4   :  { %2461 = vmatpush1.bf16.msra.mxu1 %v3368_v7 }
 0x3c5   :  { %2462 = vmatprep.subr.bf16.mxu1 %v3373_v8 }
 0x3c8   :  { %2463 = vmatpush1.bf16.msra.mxu1 %v3371_v9 }
 0x3c9   :  { %2464 = vmatprep.subr.bf16.mxu1 %v3376_v10 }
 0x3cc   :  { %2465 = vmatpush1.bf16.msra.mxu1 %v3374_v12 }
 0x3cd   :  { %2466 = vmatprep.subr.bf16.mxu1 %v3379_v13 }
 0x3d0   :  { %2467 = vmatpush1.bf16.msra.mxu1 %v3377_v16 }
 0x3d1   :  { %2468 = vmatprep.subr.bf16.mxu1 %v3382_v17 }
 0x3d4   :  { %2469 = vmatpush1.bf16.msra.mxu1 %v3380_v19 }
 0x3d7   :  { %2471 = vmatmul.mubr.bf16.vlgmr.msra.gmra.mrb[12].mxu1 %v4261_v11 }
 0x42a   :  { %v2308_v24 = vpop.f32.mrb[8].mxu1  ;;  %v2390_v25 = vpop.f32.mrb[8].mxu0 }
 0x42b   :  { %v2902_v26 = vadd.f32 %v2308_v24, %v1246_v20  ;;  %v2904_v27 = vadd.f32 %v2390_v25, %v1254_v21  ;;  %v2310_v28 = vpop.f32.mrb[9].mxu1  ;;  %v2392_v11 = vpop.f32.mrb[9].mxu0 }
 0x42c   :  { %v2903_v29 = vadd.f32 %v2310_v28, %v1250_v22  ;;  %v2905_v30 = vadd.f32 %v2392_v11, %v1258_v23  ;;  %v2312_v31 = vpop.f32.mrb[10].mxu1  ;;  %v2394_v32 = vpop.f32.mrb[10].mxu0 }
 0x42d   :  { %v2313_v33 = vpop.f32.mrb[11].mxu1  ;;  %v2395_v52 = vpop.f32.mrb[11].mxu0 }
 0x42e   :  { %v2485_v35 = vcombine.low %v2902_v26, %v2903_v29  ;;  %v2486_v36 = vcombine.high %v2902_v26, %v2903_v29  ;;  %v2487_v58 = vcombine.low %v2904_v27, %v2905_v30  ;;  %v2488_v37 = vcombine.high %v2904_v27, %v2905_v30 }
 0x430   :  { %v2495_v54 = vrot.slane %v2485_v35, %v3504_v18  ;;  %v2502_v14 = vrot.slane %v2486_v36, %v3504_v18  ;;  %v2509_v38 = vrot.slane %v2487_v58, %v3504_v18  ;;  %v2516_v39 = vrot.slane %v2488_v37, %v3504_v18 }
 0x432   :  { %v2517_v40 = vcombine.low %v2495_v54, %v2509_v38  ;;  %v2518_v42 = vcombine.high %v2495_v54, %v2509_v38  ;;  %v2519_v43 = vcombine.low %v2502_v14, %v2516_v39  ;;  %v2520_v44 = vcombine.high %v2502_v14, %v2516_v39 }
 0x434   :  { %2547 = vst [vmem:[#allocation2] sm:$0xff] %v2517_v40  ;;  %2549 = vst [vmem:[#allocation2 + $0xc] sm:$0xff] %v2518_v42 }
 0x435   :  { %2551 = vst [vmem:[#allocation2 + $0x18] sm:$0xff] %v2519_v43  ;;  %2553 = vst [vmem:[#allocation2 + $0x24] sm:$0xff] %v2520_v44 }
 0x4aa   :  { %v2472_v49 = vpop.f32.mrb[12].mxu1 }
 0x4ab   :  { %v2906_v50 = vadd.f32 %v2472_v49, %v1262_v47  ;;  %v2474_v51 = vpop.f32.mrb[13].mxu1 }
 0x4ac   :  { %v2907_v57 = vadd.f32 %v2474_v51, %v1266_v48  ;;  %v2476_v34 = vpop.f32.mrb[14].mxu1 }
 0x4ad   :  { %v2477_v55 = vpop.f32.mrb[15].mxu1 }
 0x4ae   :  { %v2521_v56 = vcombine.low %v2906_v50, %v2907_v57  ;;  %v2522_v59 = vcombine.high %v2906_v50, %v2907_v57 }
 0x4b0   :  { %v2529_v60 = vrot.slane %v2521_v56, %v3504_v18  ;;  %v2536_v61 = vrot.slane %v2522_v59, %v3504_v18  ;;  %2876 = vst.sshfl [vmem:[#allocation2 + $0x8] sm:$0x33 pattern:$0x76325410] %v2521_v56 }
 0x4b1   :  { %2877 = vst.sshfl [vmem:[#allocation2 + $0x20] sm:$0x33 pattern:$0x76325410] %v2522_v59 }
 0x4b2   :  { %v2537_v62 = vcombine.high %v2529_v60, %v2529_v60  ;;  %v2538_v63 = vcombine.high %v2536_v61, %v2536_v61 }
 0x4b4   :  { %2550 = vst [vmem:[#allocation2 + $0x14] sm:$0xf] %v2537_v62  ;;  %2554 = vst [vmem:[#allocation2 + $0x2c] sm:$0xf] %v2538_v63 }
 0x4b5   :  { %2559 = vsyncadd [#allocation3], 576  ;;  %s3409_s7 = smov [#allocation2]  }
 0x4b6   :  { %s2560_s8 = sshll.u32 %s3409_s7, 4  ;;  %s2561_s8 = int_to_ptr.vmem [resolvable:$true] %s2560_s8 }
 0x4b7   :  { %s3383_s6 = scalar_lea.vmem %s2561_s8, 192  ;;  %s3387_s20 = scalar_lea.vmem %s2561_s8, 768 }
 0x4b8   :  { %p3384_p0 = scmp.ne.s32.totalorder %s2561_s8, %s3383_s6  ;;  %p3388_p1 = scmp.lt.s32.totalorder %s2561_s8, %s2561_s8 }
 0x4b9   :  { %p3389_p2 = scmp.lt.s32.totalorder %s3387_s20, %s3383_s6 }
 0x4bb   :  { %p3390_p3 = por %p3389_p2, %p3388_p1 }
 0x4bd   :  { %p3391_p4 = pnand %p3390_p3, %p3384_p0 }
 0x4bf   :  { %3394 = shalt.err (!%p3391_p4)
}
 0x4c0   :  { %s3395_s4 = scalar_lea.hbm %s4493_s9, 192 }
 0x4c1   :  { %p3396_p5 = scmp.ne.s32.totalorder %s4493_s9, %s3395_s4  ;;  %p3399_p6 = scmp.lt.u32.totalorder %s3395_s4, %s4493_s9 }
 0x4c3   :  { %p3401_p7 = pnand %p3399_p6, %p3396_p5 }
 0x4c5   :  { %3404 = shalt.err (!%p3401_p7)
}
 0x4c6   :  { %s3410_s26 = smov 192   ;;  %s3411_s5 = smov 12  }
 0x4c7   :  { %2566 = dma.vmem_to_hbm [thread:$0]  %s2561_s8, 192, %s4493_s9, [#allocation3], %s3410_s26, %s3410_s26, %s3411_s5  }
 0x4c8   :  { %3405 = dma.done.wait [#allocation3], 768  }
 0x4c9   :  { %3406 = vsyncadd [#allocation3], 4294966528 }
 0x4ca   :  { %2570 = vsyncpa [#allocation3], 1 }

</bundles_post_ra>
